<compile_context>
chip_gen: v7x
topology: tpu7x:2x2x1
jax: 0.10.0
libtpu: 0.0.40
codegen_flags: <defaults>
</compile_context>

<pallas_src>
import functools

import jax
import jax.numpy as jnp
from jax import lax
from jax.experimental import pallas as pl
from jax.experimental.pallas import tpu as pltpu

PATCH_SIZE = 15        # restore_SLP default
WIDTH_DCP = 55         # dark-channel window (hard-coded in the module)
PATCH_TILE = 128       # patches per grid step (lane axis); multiple of 128
_PAD_BIG = 1e9         # pixel-axis pad value (never satisfies slope condition)
_DEHAZE_HW_TILE = 1024 # lane tile for the dehaze kernel


# ----------------------------------------------------------------------------
# Pallas kernels
# ----------------------------------------------------------------------------
def _slp_transmission_kernel(x_ref, y_ref, out_ref, *, patch_size, pixel_number,
                             slp_length):
    """Per-patch pairwise-slope statistics + linear fit.

    x_ref, y_ref: (n_chunks, 8, TM) -- pixels chunked on the leading axis,
                  8 pixels per sublane group, patches lane-dense.
    out_ref:      (1, TM)           -- masked transmission per patch.
    """
    n_chunks = x_ref.shape[0]
    tm = x_ref.shape[2]
    count_thresh = 0.5 * float(patch_size) ** 2

    def outer(ic, carry):
        pc, sxm, sym, sxym, sxxm, mx_xm, mn_x = carry
        xi = x_ref[ic]                       # (8, TM)
        yi = y_ref[ic]
        xi_eps = xi + 1e-8                   # fold the +1e-8 dx bias once

        # slope_count over ALL pixels j for the 8 pixels i of this chunk.
        def inner(jc, acc):
            xj = x_ref[jc]                   # (8, TM)
            yj = y_ref[jc]
            for r in range(8):               # static unroll over the 8 j rows
                xjr = xj[r:r + 1, :]         # (1, TM) -> sublane broadcast
                yjr = yj[r:r + 1, :]
                d = xi_eps - xjr             # dx + 1e-8
                dy = yi - yjr
                hit = jnp.logical_and(dy * d < 0.0, jnp.abs(dy) < jnp.abs(d))
                acc = acc + hit.astype(jnp.float32)
            return acc

        cnt = lax.fori_loop(0, n_chunks, inner, jnp.zeros_like(xi))  # (8, TM)

        pm = (cnt >= count_thresh).astype(jnp.float32)               # (8, TM)
        pc = pc + jnp.sum(pm, axis=0, keepdims=True)
        sxm = sxm + jnp.sum(xi * pm, axis=0, keepdims=True)
        sym = sym + jnp.sum(yi * pm, axis=0, keepdims=True)
        sxym = sxym + jnp.sum(xi * yi * pm, axis=0, keepdims=True)
        sxxm = sxxm + jnp.sum(xi * xi * pm, axis=0, keepdims=True)
        mx_xm = jnp.maximum(mx_xm, jnp.max(xi * pm, axis=0, keepdims=True))
        mn_x = jnp.minimum(
            mn_x, jnp.min(xi + 1e8 * (1.0 - pm), axis=0, keepdims=True))
        return (pc, sxm, sym, sxym, sxxm, mx_xm, mn_x)

    zeros = jnp.zeros((1, tm), jnp.float32)
    init = (zeros, zeros, zeros, zeros, zeros,
            jnp.full((1, tm), -jnp.inf, jnp.float32),
            jnp.full((1, tm), jnp.inf, jnp.float32))
    pc, sxm, sym, sxym, sxxm, mx_xm, mn_x = lax.fori_loop(0, n_chunks, outer,
                                                          init)

    mean_x = sxm / (pc + 1e-5)
    mean_y = sym / (pc + 1e-5)
    slp_k = (sxym - pc * mean_x * mean_y) / (sxxm - pc * mean_x * mean_x + 1e-5)
    slp_b = mean_y - slp_k * mean_x
    trans = 1.0 + slp_k / (slp_b + 1e-8)
    length = jnp.sqrt(1.0 + slp_k * slp_k) * (mx_xm - mn_x)

    tmask = ((pc > pixel_number)
             & (length > slp_length)
             & (slp_k > -1.0) & (slp_k < 0.0)
             & (trans > 0.01) & (trans < 1.0 - 0.01))
    out_ref[...] = trans * tmask.astype(jnp.float32)   # (1, TM), lane-dense


def _dehaze_kernel(img_ref, a_ref, t_ref, out_ref):
    # (image - A) / t_refined + A ; spatial dims flattened onto the lane axis.
    img = img_ref[...]          # (1, C, T_HW)
    a = a_ref[...]              # (1, C, 1)  -- spatially-constant airlight
    t = t_ref[...]              # (1, 1, T_HW)
    out_ref[...] = (img - a) / t + a


# ----------------------------------------------------------------------------
# Pallas wrappers
# ----------------------------------------------------------------------------
def _slp_transmission_flat(x_flat, y_flat, patch_size, pixel_number, slp_length,
                           patch_tile=PATCH_TILE):
    """x_flat, y_flat: (TOTAL_M, P2) -> per-patch transmission (TOTAL_M,)."""
    total, p2 = x_flat.shape
    tm = patch_tile
    n_tiles = pl.cdiv(total, tm)
    total_pad = n_tiles * tm
    p2_pad = ((p2 + 7) // 8) * 8
    n_chunks = p2_pad // 8

    pad_m = total_pad - total
    pad_p = p2_pad - p2
    # Padded *patches* (lane axis) get zeros -> output 0, sliced off below.
    # Padded *pixels* get a huge value -> never satisfy the slope condition,
    # never enter the masked statistics.
    xp = jnp.pad(x_flat.astype(jnp.float32), ((0, pad_m), (0, pad_p)),
                 constant_values=((0.0, 0.0), (0.0, _PAD_BIG)))
    yp = jnp.pad(y_flat.astype(jnp.float32), ((0, pad_m), (0, pad_p)),
                 constant_values=((0.0, 0.0), (0.0, _PAD_BIG)))
    # pixels -> (chunk, 8) leading axes, patches lane-dense.
    xt = jnp.transpose(xp).reshape(n_chunks, 8, total_pad)
    yt = jnp.transpose(yp).reshape(n_chunks, 8, total_pad)

    kern = functools.partial(_slp_transmission_kernel, patch_size=patch_size,
                             pixel_number=pixel_number, slp_length=slp_length)
    out = pl.pallas_call(
        kern,
        out_shape=jax.ShapeDtypeStruct((1, total_pad), jnp.float32),
        grid=(n_tiles,),
        in_specs=[pl.BlockSpec((n_chunks, 8, tm), lambda i: (0, 0, i)),
                  pl.BlockSpec((n_chunks, 8, tm), lambda i: (0, 0, i))],
        out_specs=pl.BlockSpec((1, tm), lambda i: (0, i)),
        compiler_params=pltpu.CompilerParams(
            dimension_semantics=("parallel",)),
    )(xt, yt)
    return out.reshape(-1)[:total]                      # (TOTAL_M,)


def _dehaze(image, a_pix, t_refined):
    n, c, h, w = image.shape
    hw = h * w
    t_hw = min(_DEHAZE_HW_TILE, ((hw + 127) // 128) * 128)
    n_hw = pl.cdiv(hw, t_hw)
    hw_pad = n_hw * t_hw

    img3 = image.reshape(n, c, hw)
    t3 = t_refined.reshape(n, 1, hw)
    if hw_pad != hw:
        img3 = jnp.pad(img3, ((0, 0), (0, 0), (0, hw_pad - hw)))
        t3 = jnp.pad(t3, ((0, 0), (0, 0), (0, hw_pad - hw)),
                     constant_values=1.0)
    a3 = a_pix.reshape(n, c, 1)

    out = pl.pallas_call(
        _dehaze_kernel,
        out_shape=jax.ShapeDtypeStruct((n, c, hw_pad), image.dtype),
        grid=(n, n_hw),
        in_specs=[pl.BlockSpec((1, c, t_hw), lambda b, j: (b, 0, j)),
                  pl.BlockSpec((1, c, 1), lambda b, j: (b, 0, 0)),
                  pl.BlockSpec((1, 1, t_hw), lambda b, j: (b, 0, j))],
        out_specs=pl.BlockSpec((1, c, t_hw), lambda b, j: (b, 0, j)),
        compiler_params=pltpu.CompilerParams(
            dimension_semantics=("parallel", "parallel")),
    )(img3, a3, t3)
    return out[:, :, :hw].reshape(n, c, h, w)


# ----------------------------------------------------------------------------
# Plain-JAX glue (pooling, sorting, gather, interpolation)
# ----------------------------------------------------------------------------
def _min_pool_valid(x, k):
    return lax.reduce_window(x, jnp.array(jnp.inf, x.dtype), lax.min,
                             (1, 1, k, k), (1, 1, 1, 1), 'VALID')


def _max_pool_valid(x, k):
    return lax.reduce_window(x, jnp.array(-jnp.inf, x.dtype), lax.max,
                             (1, 1, k, k), (1, 1, 1, 1), 'VALID')


def _box_filter(x, r):
    # AvgPool2d(kernel=2r+1, stride=1, padding=r, count_include_pad=True)
    k = 2 * r + 1
    s = lax.reduce_window(x, jnp.array(0.0, x.dtype), lax.add,
                          (1, 1, k, k), (1, 1, 1, 1),
                          ((0, 0), (0, 0), (r, r), (r, r)))
    return s / float(k * k)


def get_dark_channel(x, width_dcp=WIDTH_DCP):
    d = jnp.min(x, axis=1, keepdims=True)
    half = width_dcp // 2
    d = jnp.pad(d, ((0, 0), (0, 0), (half, half), (half, half)),
                constant_values=1.0)
    return _min_pool_valid(d, width_dcp)            # (N, 1, H, W)


def get_map_A_pixel(x):
    """Spatially-constant airlight estimate, shape (N, C, 1, 1)."""
    n, c, h, w = x.shape
    dark = get_dark_channel(x).reshape(n, -1)
    k = int(h * w * 0.001)                          # matches torch; needs H*W >= 1000
    idx = jnp.argsort(-dark, axis=1)[:, :k]         # descending
    x_flat = x.reshape(n, c, -1)
    gathered = jnp.take_along_axis(
        x_flat, jnp.broadcast_to(idx[:, None, :], (n, c, k)), axis=2)
    return jnp.mean(gathered, axis=2, keepdims=True)[:, :, :, None]   # (N,C,1,1)


def pad_and_reshape(data, patch_size):
    n, _, h, w = data.shape
    pad_h = (patch_size - h % patch_size) % patch_size
    pad_w = (patch_size - w % patch_size) % patch_size
    padded = jnp.pad(data, ((0, 0), (0, 0),
                            (pad_h // 2, pad_h - pad_h // 2),
                            (pad_w // 2, pad_w - pad_w // 2)), mode='edge')
    hp, wp = padded.shape[2], padded.shape[3]
    nh, nw = hp // patch_size, wp // patch_size
    patches = padded[:, 0].reshape(n, nh, patch_size, nw, patch_size)
    patches = patches.transpose(0, 1, 3, 2, 4).reshape(n, nh * nw,
                                                       patch_size * patch_size)
    return patches, pad_h // 2, pad_w // 2, nh, nw   # (N, M, P2), start_H, start_W


def get_transmissions(pairs, patch_size, pixel_number=10, slp_length=0.1):
    """pairs: list of (S, V1) NCHW tensors.  Returns one transmission map per
    pair.  All patches from all pairs and all batch elements are fused into a
    single Pallas call (single flat patch axis, lane-dense)."""
    metas, xs, ys = [], [], []
    for s, v1 in pairs:
        x_p, sh, sw, nh, nw = pad_and_reshape(v1, patch_size)
        y_p, _, _, _, _ = pad_and_reshape(s, patch_size)
        n, m, p2 = x_p.shape
        metas.append((n, m, sh, sw, nh, nw, s.shape[2], s.shape[3]))
        xs.append(x_p.reshape(n * m, p2))
        ys.append(y_p.reshape(n * m, p2))
    x_flat = jnp.concatenate(xs, axis=0)
    y_flat = jnp.concatenate(ys, axis=0)
    trans = _slp_transmission_flat(x_flat, y_flat, patch_size,
                                   pixel_number, slp_length)

    outs, off = [], 0
    for n, m, sh, sw, nh, nw, h, w in metas:
        t = trans[off:off + n * m].reshape(n, 1, nh, nw)
        off += n * m
        # nearest-neighbor upsample by integer factor patch_size
        t = jnp.repeat(jnp.repeat(t, patch_size, axis=2), patch_size, axis=3)
        outs.append(t[:, :, sh:h + sh, sw:w + sw])
    return outs


def obtain_t_bccr(haze, map_a, patch_size):
    t1 = (map_a - haze) / (map_a - 20.0 / 255.0)
    t2 = (map_a - haze) / (map_a - 300.0 / 255.0)
    t = jnp.max(jnp.concatenate([t1, t2], axis=1), axis=1, keepdims=True)
    half = patch_size // 2
    t = jnp.pad(t, ((0, 0), (0, 0), (half, half), (half, half)))
    t = _max_pool_valid(t, patch_size)
    return jnp.clip(t, 0.05, 1.0)


def get_percentile_value(t, bili=0.05):
    n = t.shape[0]
    flat = jnp.where(t > 0, t, 10.0).reshape(n, -1)
    s = jnp.sort(flat, axis=1)
    num = flat.shape[1]
    idx = min(int(bili * num), num - 1)
    return s[:, idx].reshape(-1, 1, 1, 1)


def guided_filter(i_img, p_img, r, eps):
    box = lambda z: _box_filter(z, r)
    n_box = box(jnp.ones_like(p_img))
    mean_i = box(i_img) / n_box
    mean_p = box(p_img) / n_box
    mean_ip = box(i_img * p_img) / n_box
    cov_ip = mean_ip - mean_i * mean_p
    mean_ii = box(i_img * i_img) / n_box
    var_i = mean_ii - mean_i * mean_i
    a = cov_ip / (var_i + eps)
    b = mean_p - a * mean_i
    mean_a = box(a) / n_box
    mean_b = box(b) / n_box
    return mean_a * i_img + mean_b


# ----------------------------------------------------------------------------
# Full forward pass (restore_SLP.forward)
# ----------------------------------------------------------------------------
def restore_slp_forward(image, patch_size=PATCH_SIZE):
    a_pix = get_map_A_pixel(image)                  # (N, C, 1, 1), spatially constant
    image_norm = image / a_pix
    mn = jnp.min(image_norm, axis=1, keepdims=True)
    mx = jnp.max(image_norm, axis=1, keepdims=True)
    image_s = 1.0 - mn / (mx + 1e-8)
    image_v1 = 1.0 / (mx + 1e-8)

    half = patch_size // 2
    # Both get_transmission invocations fused into one Pallas call.
    t_slp_1, t_slp_2 = get_transmissions(
        [(image_s, image_v1),
         (image_s[:, :, half:, half:], image_v1[:, :, half:, half:])],
        patch_size)
    t_slp_2 = jnp.pad(t_slp_2, ((0, 0), (0, 0), (half, 0), (half, 0)))
    t_slp = jnp.where((t_slp_1 != 0) & (t_slp_2 != 0), (t_slp_1 + t_slp_2) / 2,
                      jnp.where(t_slp_1 != 0, t_slp_1, t_slp_2))

    t_bl = obtain_t_bccr(image, a_pix, patch_size)
    t_min = get_percentile_value(t_slp, bili=0.05)
    t_fusion = jnp.clip(jnp.where(t_slp > 0, t_slp, t_bl), t_min, 1.0)

    mean_channel = jnp.mean(image, axis=1, keepdims=True)
    t_refined = guided_filter(mean_channel, t_fusion, r=2 * patch_size, eps=1e-3)

    return _dehaze(image, a_pix, t_refined)


# ----------------------------------------------------------------------------
if __name__ == "__main__":
    key = jax.random.PRNGKey(0)
    # H*W must be >= 1000 so that int(H*W*0.001) >= 1 (as in the torch module);
    # the module also hard-codes 3 channels in get_map_A.
    image = jax.random.uniform(key, (2, 3, 32, 32), dtype=jnp.float32)

    fwd = jax.jit(functools.partial(restore_slp_forward, patch_size=PATCH_SIZE))
    out = fwd(image)
    jax.block_until_ready(out)
    assert out.shape == (2, 3, 32, 32) and out.dtype == jnp.float32
    print("KERNEL_OK")
</pallas_src>

<mosaic_0001>
module attributes {stable_mosaic.version = 11 : i64} {
  func.func @_slp_transmission_kernel(%arg0: i32, %arg1: memref<29x8x128xf32, #tpu.memory_space<vmem>>, %arg2: memref<29x8x128xf32, #tpu.memory_space<vmem>>, %arg3: memref<1x128xf32, #tpu.memory_space<vmem>>) attributes {dimension_semantics = [#tpu.dimension_semantics<parallel>], iteration_bounds = array<i64: 1>, scalar_prefetch = 0 : i64, scratch_operands = 0 : i64, tpu.core_type = #tpu.core_type<tc>, window_params = [{transform_indices = @transform_0, window_bounds = array<i64: 29, 8, 128>}, {transform_indices = @transform_1, window_bounds = array<i64: 29, 8, 128>}, {transform_indices = @transform_2, window_bounds = array<i64: 1, 128>}]} {
    %cst = arith.constant 0.000000e+00 : f32
    %0 = vector.broadcast %cst : f32 to vector<1x128xf32>
    %cst_0 = arith.constant 0xFF800000 : f32
    %1 = vector.broadcast %cst_0 : f32 to vector<1x128xf32>
    %cst_1 = arith.constant 0x7F800000 : f32
    %2 = vector.broadcast %cst_1 : f32 to vector<1x128xf32>
    %c0_i32 = arith.constant 0 : i32
    %c29_i32 = arith.constant 29 : i32
    %3 = arith.addi %c0_i32, %c29_i32 : i32
    %c1_i32 = arith.constant 1 : i32
    %4:7 = scf.for %arg4 = %c0_i32 to %3 step %c1_i32 iter_args(%arg5 = %0, %arg6 = %0, %arg7 = %0, %arg8 = %0, %arg9 = %0, %arg10 = %1, %arg11 = %2) -> (vector<1x128xf32>, vector<1x128xf32>, vector<1x128xf32>, vector<1x128xf32>, vector<1x128xf32>, vector<1x128xf32>, vector<1x128xf32>)  : i32 {
      %54 = arith.index_cast %arg4 : i32 to index
      %c0_16 = arith.constant 0 : index
      %c0_17 = arith.constant 0 : index
      %55 = vector.load %arg1[%54, %c0_16, %c0_17] : memref<29x8x128xf32, #tpu.memory_space<vmem>>, vector<1x8x128xf32>
      %56 = vector.shape_cast %55 : vector<1x8x128xf32> to vector<8x128xf32>
      %57 = arith.index_cast %arg4 : i32 to index
      %c0_18 = arith.constant 0 : index
      %c0_19 = arith.constant 0 : index
      %58 = vector.load %arg2[%57, %c0_18, %c0_19] : memref<29x8x128xf32, #tpu.memory_space<vmem>>, vector<1x8x128xf32>
      %59 = vector.shape_cast %58 : vector<1x8x128xf32> to vector<8x128xf32>
      %cst_20 = arith.constant 9.99999993E-9 : f32
      %60 = vector.broadcast %cst_20 : f32 to vector<8x128xf32>
      %61 = arith.addf %56, %60 : vector<8x128xf32>
      %cst_21 = arith.constant 0.000000e+00 : f32
      %62 = vector.broadcast %cst_21 : f32 to vector<8x128xf32>
      %c0_i32_22 = arith.constant 0 : i32
      %c29_i32_23 = arith.constant 29 : i32
      %63 = arith.addi %c0_i32_22, %c29_i32_23 : i32
      %c1_i32_24 = arith.constant 1 : i32
      %64 = scf.for %arg12 = %c0_i32_22 to %63 step %c1_i32_24 iter_args(%arg13 = %62) -> (vector<8x128xf32>)  : i32 {
        %102 = arith.index_cast %arg12 : i32 to index
        %c0_36 = arith.constant 0 : index
        %c0_37 = arith.constant 0 : index
        %103 = vector.load %arg1[%102, %c0_36, %c0_37] : memref<29x8x128xf32, #tpu.memory_space<vmem>>, vector<1x8x128xf32>
        %104 = vector.shape_cast %103 : vector<1x8x128xf32> to vector<8x128xf32>
        %105 = arith.index_cast %arg12 : i32 to index
        %c0_38 = arith.constant 0 : index
        %c0_39 = arith.constant 0 : index
        %106 = vector.load %arg2[%105, %c0_38, %c0_39] : memref<29x8x128xf32, #tpu.memory_space<vmem>>, vector<1x8x128xf32>
        %107 = vector.shape_cast %106 : vector<1x8x128xf32> to vector<8x128xf32>
        %108 = vector.extract_strided_slice %104 {offsets = [0, 0], sizes = [1, 128], strides = [1, 1]} : vector<8x128xf32> to vector<1x128xf32>
        %109 = vector.extract_strided_slice %107 {offsets = [0, 0], sizes = [1, 128], strides = [1, 1]} : vector<8x128xf32> to vector<1x128xf32>
        %110 = vector.broadcast %108 : vector<1x128xf32> to vector<8x128xf32>
        %111 = arith.subf %61, %110 : vector<8x128xf32>
        %112 = vector.broadcast %109 : vector<1x128xf32> to vector<8x128xf32>
        %113 = arith.subf %59, %112 : vector<8x128xf32>
        %114 = arith.mulf %113, %111 : vector<8x128xf32>
        %cst_40 = arith.constant 0.000000e+00 : f32
        %115 = vector.broadcast %cst_40 : f32 to vector<8x128xf32>
        %116 = arith.cmpf olt, %114, %115 : vector<8x128xf32>
        %117 = math.absf %113 : vector<8x128xf32>
        %118 = math.absf %111 : vector<8x128xf32>
        %119 = arith.cmpf olt, %117, %118 : vector<8x128xf32>
        %120 = arith.andi %116, %119 : vector<8x128xi1>
        %121 = arith.extui %120 : vector<8x128xi1> to vector<8x128xi32>
        %122 = arith.sitofp %121 : vector<8x128xi32> to vector<8x128xf32>
        %123 = arith.addf %arg13, %122 : vector<8x128xf32>
        %124 = vector.extract_strided_slice %104 {offsets = [1, 0], sizes = [1, 128], strides = [1, 1]} : vector<8x128xf32> to vector<1x128xf32>
        %125 = vector.extract_strided_slice %107 {offsets = [1, 0], sizes = [1, 128], strides = [1, 1]} : vector<8x128xf32> to vector<1x128xf32>
        %126 = vector.broadcast %124 : vector<1x128xf32> to vector<8x128xf32>
        %127 = arith.subf %61, %126 : vector<8x128xf32>
        %128 = vector.broadcast %125 : vector<1x128xf32> to vector<8x128xf32>
        %129 = arith.subf %59, %128 : vector<8x128xf32>
        %130 = arith.mulf %129, %127 : vector<8x128xf32>
        %cst_41 = arith.constant 0.000000e+00 : f32
        %131 = vector.broadcast %cst_41 : f32 to vector<8x128xf32>
        %132 = arith.cmpf olt, %130, %131 : vector<8x128xf32>
        %133 = math.absf %129 : vector<8x128xf32>
        %134 = math.absf %127 : vector<8x128xf32>
        %135 = arith.cmpf olt, %133, %134 : vector<8x128xf32>
        %136 = arith.andi %132, %135 : vector<8x128xi1>
        %137 = arith.extui %136 : vector<8x128xi1> to vector<8x128xi32>
        %138 = arith.sitofp %137 : vector<8x128xi32> to vector<8x128xf32>
        %139 = arith.addf %123, %138 : vector<8x128xf32>
        %140 = vector.extract_strided_slice %104 {offsets = [2, 0], sizes = [1, 128], strides = [1, 1]} : vector<8x128xf32> to vector<1x128xf32>
        %141 = vector.extract_strided_slice %107 {offsets = [2, 0], sizes = [1, 128], strides = [1, 1]} : vector<8x128xf32> to vector<1x128xf32>
        %142 = vector.broadcast %140 : vector<1x128xf32> to vector<8x128xf32>
        %143 = arith.subf %61, %142 : vector<8x128xf32>
        %144 = vector.broadcast %141 : vector<1x128xf32> to vector<8x128xf32>
        %145 = arith.subf %59, %144 : vector<8x128xf32>
        %146 = arith.mulf %145, %143 : vector<8x128xf32>
        %cst_42 = arith.constant 0.000000e+00 : f32
        %147 = vector.broadcast %cst_42 : f32 to vector<8x128xf32>
        %148 = arith.cmpf olt, %146, %147 : vector<8x128xf32>
        %149 = math.absf %145 : vector<8x128xf32>
        %150 = math.absf %143 : vector<8x128xf32>
        %151 = arith.cmpf olt, %149, %150 : vector<8x128xf32>
        %152 = arith.andi %148, %151 : vector<8x128xi1>
        %153 = arith.extui %152 : vector<8x128xi1> to vector<8x128xi32>
        %154 = arith.sitofp %153 : vector<8x128xi32> to vector<8x128xf32>
        %155 = arith.addf %139, %154 : vector<8x128xf32>
        %156 = vector.extract_strided_slice %104 {offsets = [3, 0], sizes = [1, 128], strides = [1, 1]} : vector<8x128xf32> to vector<1x128xf32>
        %157 = vector.extract_strided_slice %107 {offsets = [3, 0], sizes = [1, 128], strides = [1, 1]} : vector<8x128xf32> to vector<1x128xf32>
        %158 = vector.broadcast %156 : vector<1x128xf32> to vector<8x128xf32>
        %159 = arith.subf %61, %158 : vector<8x128xf32>
        %160 = vector.broadcast %157 : vector<1x128xf32> to vector<8x128xf32>
        %161 = arith.subf %59, %160 : vector<8x128xf32>
        %162 = arith.mulf %161, %159 : vector<8x128xf32>
        %cst_43 = arith.constant 0.000000e+00 : f32
        %163 = vector.broadcast %cst_43 : f32 to vector<8x128xf32>
        %164 = arith.cmpf olt, %162, %163 : vector<8x128xf32>
        %165 = math.absf %161 : vector<8x128xf32>
        %166 = math.absf %159 : vector<8x128xf32>
        %167 = arith.cmpf olt, %165, %166 : vector<8x128xf32>
        %168 = arith.andi %164, %167 : vector<8x128xi1>
        %169 = arith.extui %168 : vector<8x128xi1> to vector<8x128xi32>
        %170 = arith.sitofp %169 : vector<8x128xi32> to vector<8x128xf32>
        %171 = arith.addf %155, %170 : vector<8x128xf32>
        %172 = vector.extract_strided_slice %104 {offsets = [4, 0], sizes = [1, 128], strides = [1, 1]} : vector<8x128xf32> to vector<1x128xf32>
        %173 = vector.extract_strided_slice %107 {offsets = [4, 0], sizes = [1, 128], strides = [1, 1]} : vector<8x128xf32> to vector<1x128xf32>
        %174 = vector.broadcast %172 : vector<1x128xf32> to vector<8x128xf32>
        %175 = arith.subf %61, %174 : vector<8x128xf32>
        %176 = vector.broadcast %173 : vector<1x128xf32> to vector<8x128xf32>
        %177 = arith.subf %59, %176 : vector<8x128xf32>
        %178 = arith.mulf %177, %175 : vector<8x128xf32>
        %cst_44 = arith.constant 0.000000e+00 : f32
        %179 = vector.broadcast %cst_44 : f32 to vector<8x128xf32>
        %180 = arith.cmpf olt, %178, %179 : vector<8x128xf32>
        %181 = math.absf %177 : vector<8x128xf32>
        %182 = math.absf %175 : vector<8x128xf32>
        %183 = arith.cmpf olt, %181, %182 : vector<8x128xf32>
        %184 = arith.andi %180, %183 : vector<8x128xi1>
        %185 = arith.extui %184 : vector<8x128xi1> to vector<8x128xi32>
        %186 = arith.sitofp %185 : vector<8x128xi32> to vector<8x128xf32>
        %187 = arith.addf %171, %186 : vector<8x128xf32>
        %188 = vector.extract_strided_slice %104 {offsets = [5, 0], sizes = [1, 128], strides = [1, 1]} : vector<8x128xf32> to vector<1x128xf32>
        %189 = vector.extract_strided_slice %107 {offsets = [5, 0], sizes = [1, 128], strides = [1, 1]} : vector<8x128xf32> to vector<1x128xf32>
        %190 = vector.broadcast %188 : vector<1x128xf32> to vector<8x128xf32>
        %191 = arith.subf %61, %190 : vector<8x128xf32>
        %192 = vector.broadcast %189 : vector<1x128xf32> to vector<8x128xf32>
        %193 = arith.subf %59, %192 : vector<8x128xf32>
        %194 = arith.mulf %193, %191 : vector<8x128xf32>
        %cst_45 = arith.constant 0.000000e+00 : f32
        %195 = vector.broadcast %cst_45 : f32 to vector<8x128xf32>
        %196 = arith.cmpf olt, %194, %195 : vector<8x128xf32>
        %197 = math.absf %193 : vector<8x128xf32>
        %198 = math.absf %191 : vector<8x128xf32>
        %199 = arith.cmpf olt, %197, %198 : vector<8x128xf32>
        %200 = arith.andi %196, %199 : vector<8x128xi1>
        %201 = arith.extui %200 : vector<8x128xi1> to vector<8x128xi32>
        %202 = arith.sitofp %201 : vector<8x128xi32> to vector<8x128xf32>
        %203 = arith.addf %187, %202 : vector<8x128xf32>
        %204 = vector.extract_strided_slice %104 {offsets = [6, 0], sizes = [1, 128], strides = [1, 1]} : vector<8x128xf32> to vector<1x128xf32>
        %205 = vector.extract_strided_slice %107 {offsets = [6, 0], sizes = [1, 128], strides = [1, 1]} : vector<8x128xf32> to vector<1x128xf32>
        %206 = vector.broadcast %204 : vector<1x128xf32> to vector<8x128xf32>
        %207 = arith.subf %61, %206 : vector<8x128xf32>
        %208 = vector.broadcast %205 : vector<1x128xf32> to vector<8x128xf32>
        %209 = arith.subf %59, %208 : vector<8x128xf32>
        %210 = arith.mulf %209, %207 : vector<8x128xf32>
        %cst_46 = arith.constant 0.000000e+00 : f32
        %211 = vector.broadcast %cst_46 : f32 to vector<8x128xf32>
        %212 = arith.cmpf olt, %210, %211 : vector<8x128xf32>
        %213 = math.absf %209 : vector<8x128xf32>
        %214 = math.absf %207 : vector<8x128xf32>
        %215 = arith.cmpf olt, %213, %214 : vector<8x128xf32>
        %216 = arith.andi %212, %215 : vector<8x128xi1>
        %217 = arith.extui %216 : vector<8x128xi1> to vector<8x128xi32>
        %218 = arith.sitofp %217 : vector<8x128xi32> to vector<8x128xf32>
        %219 = arith.addf %203, %218 : vector<8x128xf32>
        %220 = vector.extract_strided_slice %104 {offsets = [7, 0], sizes = [1, 128], strides = [1, 1]} : vector<8x128xf32> to vector<1x128xf32>
        %221 = vector.extract_strided_slice %107 {offsets = [7, 0], sizes = [1, 128], strides = [1, 1]} : vector<8x128xf32> to vector<1x128xf32>
        %222 = vector.broadcast %220 : vector<1x128xf32> to vector<8x128xf32>
        %223 = arith.subf %61, %222 : vector<8x128xf32>
        %224 = vector.broadcast %221 : vector<1x128xf32> to vector<8x128xf32>
        %225 = arith.subf %59, %224 : vector<8x128xf32>
        %226 = arith.mulf %225, %223 : vector<8x128xf32>
        %cst_47 = arith.constant 0.000000e+00 : f32
        %227 = vector.broadcast %cst_47 : f32 to vector<8x128xf32>
        %228 = arith.cmpf olt, %226, %227 : vector<8x128xf32>
        %229 = math.absf %225 : vector<8x128xf32>
        %230 = math.absf %223 : vector<8x128xf32>
        %231 = arith.cmpf olt, %229, %230 : vector<8x128xf32>
        %232 = arith.andi %228, %231 : vector<8x128xi1>
        %233 = arith.extui %232 : vector<8x128xi1> to vector<8x128xi32>
        %234 = arith.sitofp %233 : vector<8x128xi32> to vector<8x128xf32>
        %235 = arith.addf %219, %234 : vector<8x128xf32>
        scf.yield %235 : vector<8x128xf32>
      }
      %c29_i32_25 = arith.constant 29 : i32
      %cst_26 = arith.constant 1.125000e+02 : f32
      %65 = vector.broadcast %cst_26 : f32 to vector<8x128xf32>
      %66 = arith.cmpf oge, %64, %65 : vector<8x128xf32>
      %67 = arith.extui %66 : vector<8x128xi1> to vector<8x128xi32>
      %68 = arith.sitofp %67 : vector<8x128xi32> to vector<8x128xf32>
      %cst_27 = arith.constant dense<0.000000e+00> : vector<128xf32>
      %69 = vector.multi_reduction <add>, %68, %cst_27 [0] : vector<8x128xf32> to vector<128xf32>
      %70 = vector.shape_cast %69 : vector<128xf32> to vector<1x128xf32>
      %71 = arith.addf %arg5, %70 : vector<1x128xf32>
      %72 = arith.mulf %56, %68 : vector<8x128xf32>
      %cst_28 = arith.constant dense<0.000000e+00> : vector<128xf32>
      %73 = vector.multi_reduction <add>, %72, %cst_28 [0] : vector<8x128xf32> to vector<128xf32>
      %74 = vector.shape_cast %73 : vector<128xf32> to vector<1x128xf32>
      %75 = arith.addf %arg6, %74 : vector<1x128xf32>
      %76 = arith.mulf %59, %68 : vector<8x128xf32>
      %cst_29 = arith.constant dense<0.000000e+00> : vector<128xf32>
      %77 = vector.multi_reduction <add>, %76, %cst_29 [0] : vector<8x128xf32> to vector<128xf32>
      %78 = vector.shape_cast %77 : vector<128xf32> to vector<1x128xf32>
      %79 = arith.addf %arg7, %78 : vector<1x128xf32>
      %80 = arith.mulf %56, %59 : vector<8x128xf32>
      %81 = arith.mulf %80, %68 : vector<8x128xf32>
      %cst_30 = arith.constant dense<0.000000e+00> : vector<128xf32>
      %82 = vector.multi_reduction <add>, %81, %cst_30 [0] : vector<8x128xf32> to vector<128xf32>
      %83 = vector.shape_cast %82 : vector<128xf32> to vector<1x128xf32>
      %84 = arith.addf %arg8, %83 : vector<1x128xf32>
      %85 = arith.mulf %56, %56 : vector<8x128xf32>
      %86 = arith.mulf %85, %68 : vector<8x128xf32>
      %cst_31 = arith.constant dense<0.000000e+00> : vector<128xf32>
      %87 = vector.multi_reduction <add>, %86, %cst_31 [0] : vector<8x128xf32> to vector<128xf32>
      %88 = vector.shape_cast %87 : vector<128xf32> to vector<1x128xf32>
      %89 = arith.addf %arg9, %88 : vector<1x128xf32>
      %90 = arith.mulf %56, %68 : vector<8x128xf32>
      %cst_32 = arith.constant dense<0xFF800000> : vector<128xf32>
      %91 = vector.multi_reduction <maximumf>, %90, %cst_32 [0] : vector<8x128xf32> to vector<128xf32>
      %92 = vector.shape_cast %91 : vector<128xf32> to vector<1x128xf32>
      %93 = arith.maximumf %arg10, %92 : vector<1x128xf32>
      %cst_33 = arith.constant 1.000000e+00 : f32
      %94 = vector.broadcast %cst_33 : f32 to vector<8x128xf32>
      %95 = arith.subf %94, %68 : vector<8x128xf32>
      %cst_34 = arith.constant 1.000000e+08 : f32
      %96 = vector.broadcast %cst_34 : f32 to vector<8x128xf32>
      %97 = arith.mulf %96, %95 : vector<8x128xf32>
      %98 = arith.addf %56, %97 : vector<8x128xf32>
      %cst_35 = arith.constant dense<0x7F800000> : vector<128xf32>
      %99 = vector.multi_reduction <minimumf>, %98, %cst_35 [0] : vector<8x128xf32> to vector<128xf32>
      %100 = vector.shape_cast %99 : vector<128xf32> to vector<1x128xf32>
      %101 = arith.minimumf %arg11, %100 : vector<1x128xf32>
      scf.yield %71, %75, %79, %84, %89, %93, %101 : vector<1x128xf32>, vector<1x128xf32>, vector<1x128xf32>, vector<1x128xf32>, vector<1x128xf32>, vector<1x128xf32>, vector<1x128xf32>
    }
    %c29_i32_2 = arith.constant 29 : i32
    %cst_3 = arith.constant 9.99999974E-6 : f32
    %5 = vector.broadcast %cst_3 : f32 to vector<1x128xf32>
    %6 = arith.addf %4#0, %5 : vector<1x128xf32>
    %7 = arith.divf %4#1, %6 : vector<1x128xf32>
    %cst_4 = arith.constant 9.99999974E-6 : f32
    %8 = vector.broadcast %cst_4 : f32 to vector<1x128xf32>
    %9 = arith.addf %4#0, %8 : vector<1x128xf32>
    %10 = arith.divf %4#2, %9 : vector<1x128xf32>
    %11 = arith.mulf %4#0, %7 : vector<1x128xf32>
    %12 = arith.mulf %11, %10 : vector<1x128xf32>
    %13 = arith.subf %4#3, %12 : vector<1x128xf32>
    %14 = arith.mulf %4#0, %7 : vector<1x128xf32>
    %15 = arith.mulf %14, %7 : vector<1x128xf32>
    %16 = arith.subf %4#4, %15 : vector<1x128xf32>
    %cst_5 = arith.constant 9.99999974E-6 : f32
    %17 = vector.broadcast %cst_5 : f32 to vector<1x128xf32>
    %18 = arith.addf %16, %17 : vector<1x128xf32>
    %19 = arith.divf %13, %18 : vector<1x128xf32>
    %20 = arith.mulf %19, %7 : vector<1x128xf32>
    %21 = arith.subf %10, %20 : vector<1x128xf32>
    %cst_6 = arith.constant 9.99999993E-9 : f32
    %22 = vector.broadcast %cst_6 : f32 to vector<1x128xf32>
    %23 = arith.addf %21, %22 : vector<1x128xf32>
    %24 = arith.divf %19, %23 : vector<1x128xf32>
    %cst_7 = arith.constant 1.000000e+00 : f32
    %25 = vector.broadcast %cst_7 : f32 to vector<1x128xf32>
    %26 = arith.addf %25, %24 : vector<1x128xf32>
    %27 = arith.mulf %19, %19 : vector<1x128xf32>
    %cst_8 = arith.constant 1.000000e+00 : f32
    %28 = vector.broadcast %cst_8 : f32 to vector<1x128xf32>
    %29 = arith.addf %28, %27 : vector<1x128xf32>
    %30 = math.sqrt %29 : vector<1x128xf32>
    %31 = arith.subf %4#5, %4#6 : vector<1x128xf32>
    %32 = arith.mulf %30, %31 : vector<1x128xf32>
    %cst_9 = arith.constant 1.000000e+01 : f32
    %33 = vector.broadcast %cst_9 : f32 to vector<1x128xf32>
    %34 = arith.cmpf ogt, %4#0, %33 : vector<1x128xf32>
    %cst_10 = arith.constant 1.000000e-01 : f32
    %35 = vector.broadcast %cst_10 : f32 to vector<1x128xf32>
    %36 = arith.cmpf ogt, %32, %35 : vector<1x128xf32>
    %37 = arith.andi %34, %36 : vector<1x128xi1>
    %cst_11 = arith.constant -1.000000e+00 : f32
    %38 = vector.broadcast %cst_11 : f32 to vector<1x128xf32>
    %39 = arith.cmpf ogt, %19, %38 : vector<1x128xf32>
    %40 = arith.andi %37, %39 : vector<1x128xi1>
    %cst_12 = arith.constant 0.000000e+00 : f32
    %41 = vector.broadcast %cst_12 : f32 to vector<1x128xf32>
    %42 = arith.cmpf olt, %19, %41 : vector<1x128xf32>
    %43 = arith.andi %40, %42 : vector<1x128xi1>
    %cst_13 = arith.constant 0.00999999977 : f32
    %44 = vector.broadcast %cst_13 : f32 to vector<1x128xf32>
    %45 = arith.cmpf ogt, %26, %44 : vector<1x128xf32>
    %46 = arith.andi %43, %45 : vector<1x128xi1>
    %cst_14 = arith.constant 9.900000e-01 : f32
    %47 = vector.broadcast %cst_14 : f32 to vector<1x128xf32>
    %48 = arith.cmpf olt, %26, %47 : vector<1x128xf32>
    %49 = arith.andi %46, %48 : vector<1x128xi1>
    %50 = arith.extui %49 : vector<1x128xi1> to vector<1x128xi32>
    %51 = arith.sitofp %50 : vector<1x128xi32> to vector<1x128xf32>
    %52 = arith.mulf %26, %51 : vector<1x128xf32>
    %c0 = arith.constant 0 : index
    %c0_15 = arith.constant 0 : index
    %53 = vector.load %arg3[%c0, %c0_15] : memref<1x128xf32, #tpu.memory_space<vmem>>, vector<1x128xf32>
    tpu.vector_store %arg3[%c0, %c0_15], %52 {strides = array<i32>} : memref<1x128xf32, #tpu.memory_space<vmem>>, vector<1x128xf32>,
    return
  }
  func.func @transform_0(%arg0: i32) -> (i32, i32, i32) {
    %c0_i32 = arith.constant 0 : i32
    %c0_i32_0 = arith.constant 0 : i32
    %c0_i32_1 = arith.constant 0 : i32
    return %c0_i32, %c0_i32_0, %arg0 : i32, i32, i32
  }
  func.func @transform_1(%arg0: i32) -> (i32, i32, i32) {
    %c0_i32 = arith.constant 0 : i32
    %c0_i32_0 = arith.constant 0 : i32
    %c0_i32_1 = arith.constant 0 : i32
    return %c0_i32, %c0_i32_0, %arg0 : i32, i32, i32
  }
  func.func @transform_2(%arg0: i32) -> (i32, i32) {
    %c0_i32 = arith.constant 0 : i32
    %c0_i32_0 = arith.constant 0 : i32
    return %c0_i32, %arg0 : i32, i32
  }
}

module attributes {stable_mosaic.version = 11 : i64} {
  func.func @_dehaze_kernel(%arg0: i32, %arg1: i32, %arg2: memref<1x3x1024xf32, #tpu.memory_space<vmem>>, %arg3: memref<1x3x1xf32, #tpu.memory_space<vmem>>, %arg4: memref<1x1x1024xf32, #tpu.memory_space<vmem>>, %arg5: memref<1x3x1024xf32, #tpu.memory_space<vmem>>) attributes {dimension_semantics = [#tpu.dimension_semantics<parallel>, #tpu.dimension_semantics<parallel>], iteration_bounds = array<i64: 2, 1>, scalar_prefetch = 0 : i64, scratch_operands = 0 : i64, tpu.core_type = #tpu.core_type<tc>, window_params = [{transform_indices = @transform_0, window_bounds = array<i64: 1, 3, 1024>}, {transform_indices = @transform_1, window_bounds = array<i64: 1, 3, 1>}, {transform_indices = @transform_2, window_bounds = array<i64: 1, 1, 1024>}, {transform_indices = @transform_3, window_bounds = array<i64: 1, 3, 1024>}]} {
    %c0 = arith.constant 0 : index
    %c0_0 = arith.constant 0 : index
    %c0_1 = arith.constant 0 : index
    %0 = vector.load %arg2[%c0, %c0_0, %c0_1] : memref<1x3x1024xf32, #tpu.memory_space<vmem>>, vector<1x3x1024xf32>
    %c0_2 = arith.constant 0 : index
    %c0_3 = arith.constant 0 : index
    %c0_4 = arith.constant 0 : index
    %1 = vector.load %arg3[%c0_2, %c0_3, %c0_4] : memref<1x3x1xf32, #tpu.memory_space<vmem>>, vector<1x3x1xf32>
    %c0_5 = arith.constant 0 : index
    %c0_6 = arith.constant 0 : index
    %c0_7 = arith.constant 0 : index
    %2 = vector.load %arg4[%c0_5, %c0_6, %c0_7] : memref<1x1x1024xf32, #tpu.memory_space<vmem>>, vector<1x1x1024xf32>
    %3 = vector.broadcast %1 : vector<1x3x1xf32> to vector<1x3x1024xf32>
    %4 = arith.subf %0, %3 : vector<1x3x1024xf32>
    %5 = vector.broadcast %2 : vector<1x1x1024xf32> to vector<1x3x1024xf32>
    %6 = arith.divf %4, %5 : vector<1x3x1024xf32>
    %7 = vector.broadcast %1 : vector<1x3x1xf32> to vector<1x3x1024xf32>
    %8 = arith.addf %6, %7 : vector<1x3x1024xf32>
    %c0_8 = arith.constant 0 : index
    %c0_9 = arith.constant 0 : index
    %c0_10 = arith.constant 0 : index
    %9 = vector.load %arg5[%c0_8, %c0_9, %c0_10] : memref<1x3x1024xf32, #tpu.memory_space<vmem>>, vector<1x3x1024xf32>
    tpu.vector_store %arg5[%c0_8, %c0_9, %c0_10], %8 {strides = array<i32>} : memref<1x3x1024xf32, #tpu.memory_space<vmem>>, vector<1x3x1024xf32>,
    return
  }
  func.func @transform_0(%arg0: i32, %arg1: i32) -> (i32, i32, i32) {
    %c0_i32 = arith.constant 0 : i32
    %c0_i32_0 = arith.constant 0 : i32
    return %arg0, %c0_i32, %arg1 : i32, i32, i32
  }
  func.func @transform_1(%arg0: i32, %arg1: i32) -> (i32, i32, i32) {
    %c0_i32 = arith.constant 0 : i32
    %c0_i32_0 = arith.constant 0 : i32
    %c0_i32_1 = arith.constant 0 : i32
    return %arg0, %c0_i32, %c0_i32_0 : i32, i32, i32
  }
  func.func @transform_2(%arg0: i32, %arg1: i32) -> (i32, i32, i32) {
    %c0_i32 = arith.constant 0 : i32
    %c0_i32_0 = arith.constant 0 : i32
    return %arg0, %c0_i32, %arg1 : i32, i32, i32
  }
  func.func @transform_3(%arg0: i32, %arg1: i32) -> (i32, i32, i32) {
    %c0_i32 = arith.constant 0 : i32
    %c0_i32_0 = arith.constant 0 : i32
    return %arg0, %c0_i32, %arg1 : i32, i32, i32
  }
}

</mosaic_0001>

<bundles_post_ra>
// kernel: neg.0
= control target key start
LH: loop header
LB: loop body
LE: loop exit
PB: predicated region body
PF: predicated region fallthrough
CT: control target
= control target key end

     0   :  { %s136_s0 = inlined_call_operand.vmem [shape: f32[2,1,32,32], index: 0, kind: input, shape index: {}]   ;;  %s137_s1 = inlined_call_operand.vmem [shape: f32[2,1,32,32], index: 1, kind: output, shape index: {}]  }
   0x1   :  { %v2_v0 = vld [vmem:[%s136_s0] sm:$0xff]  ;;  %v66_v2 = vld [vmem:[%s136_s0 + $0x8] sm:$0xff]  ;;  %v70_v7 = vld [vmem:[%s136_s0 + $0x10] sm:$0xff] }
   0x2   :  { %v64_v1 = vld [vmem:[%s136_s0 + $0x20] sm:$0xff]  ;;  %v5_v3 = vxor.u32 2147483648, %v2_v0  ;;  %v20_v5 = vxor.u32 2147483648, %v66_v2  ;;  %v68_v6 = vld [vmem:[%s136_s0 + $0x28] sm:$0xff]  ;;  %v72_v8 = vld [vmem:[%s136_s0 + $0x30] sm:$0xff]  ;;  %v36_v10 = vxor.u32 2147483648, %v70_v7 }
   0x3   :  { %v12_v4 = vxor.u32 2147483648, %v64_v1  ;;  %v28_v9 = vxor.u32 2147483648, %v68_v6  ;;  %v44_v11 = vxor.u32 2147483648, %v72_v8  ;;  %v74_v12 = vld [vmem:[%s136_s0 + $0x18] sm:$0xff] }
   0x4   :  { %v76_v13 = vld [vmem:[%s136_s0 + $0x38] sm:$0xff]  ;;  %7 = vst [vmem:[%s137_s1] sm:$0xff] %v5_v3  ;;  %67 = vst [vmem:[%s137_s1 + $0x8] sm:$0xff] %v20_v5  ;;  %v52_v14 = vxor.u32 2147483648, %v74_v12 }
   0x5   :  { %65 = vst [vmem:[%s137_s1 + $0x20] sm:$0xff] %v12_v4  ;;  %v60_v15 = vxor.u32 2147483648, %v76_v13  ;;  %69 = vst [vmem:[%s137_s1 + $0x28] sm:$0xff] %v28_v9 }
   0x6   :  { %71 = vst [vmem:[%s137_s1 + $0x10] sm:$0xff] %v36_v10  ;;  %73 = vst [vmem:[%s137_s1 + $0x30] sm:$0xff] %v44_v11 }
   0x7   :  { %75 = vst [vmem:[%s137_s1 + $0x18] sm:$0xff] %v52_v14  ;;  %77 = vst [vmem:[%s137_s1 + $0x38] sm:$0xff] %v60_v15 }

// kernel: squeeze.11
= control target key start
LH: loop header
LB: loop body
LE: loop exit
PB: predicated region body
PF: predicated region fallthrough
CT: control target
= control target key end

     0   :  { %vm151_vm0 = vcmask 121856   ;;  %vm301_vm1 = vcmask 1047556   ;;  %s929_s21 = smov 113   ;;  %s1270_s0 = inlined_call_operand.vmem [shape: f32[2,1,30,30], index: 0, kind: input, shape index: {}]   ;;  %s1271_s1 = inlined_call_operand.vmem [shape: f32[2,2,15,2,15], index: 1, kind: output, shape index: {}]  }
   0x1   :  { %v866_v0 = vld [vmem:[%s1270_s0 + $0x6] sm:$0x3]  ;;  %v867_v1 = vld [vmem:[%s1270_s0 + $0x4] sm:$0x3]  ;;  %v868_v2 = vld [vmem:[%s1270_s0 + $0x2] sm:$0x3] }
   0x2   :  { %138 = vst [vmem:[#allocation1 + $0x18] sm:$0x3] %v866_v0  ;;  %143 = vst [vmem:[#allocation1 + $0x10] sm:$0x3] %v867_v1  ;;  %v148_v3 = vld [vmem:[%s1270_s0] sm:$0x3] }
   0x3   :  { %147 = vst [vmem:[#allocation1 + $0x8] sm:$0x3] %v868_v2  ;;  %149 = vst [vmem:[#allocation1] sm:$0x3] %v148_v3  ;;  %v858_v4 = vld [vmem:[%s1270_s0 + $0x16] sm:$0x3] }
   0x4   :  { %v859_v5 = vld [vmem:[%s1270_s0 + $0x14] sm:$0x3]  ;;  %v860_v6 = vld [vmem:[%s1270_s0 + $0x12] sm:$0x3]  ;;  %98 = vst [vmem:[#allocation1 + $0x58] sm:$0x3] %v858_v4 }
   0x5   :  { %103 = vst [vmem:[#allocation1 + $0x50] sm:$0x3] %v859_v5  ;;  %108 = vst [vmem:[#allocation1 + $0x48] sm:$0x3] %v860_v6  ;;  %v861_v7 = vld [vmem:[%s1270_s0 + $0x10] sm:$0x3] }
   0x6   :  { %v862_v8 = vld [vmem:[%s1270_s0 + $0xe] sm:$0x3]  ;;  %v863_v9 = vld [vmem:[%s1270_s0 + $0xc] sm:$0x3]  ;;  %113 = vst [vmem:[#allocation1 + $0x40] sm:$0x3] %v861_v7 }
   0x7   :  { %118 = vst [vmem:[#allocation1 + $0x38] sm:$0x3] %v862_v8  ;;  %123 = vst [vmem:[#allocation1 + $0x30] sm:$0x3] %v863_v9  ;;  %v864_v10 = vld [vmem:[%s1270_s0 + $0xa] sm:$0x3] }
   0x8   :  { %v865_v11 = vld [vmem:[%s1270_s0 + $0x8] sm:$0x3]  ;;  %v854_v12 = vld [vmem:[%s1270_s0 + $0x1e] sm:$0x3]  ;;  %128 = vst [vmem:[#allocation1 + $0x28] sm:$0x3] %v864_v10 }
   0x9   :  { %133 = vst [vmem:[#allocation1 + $0x20] sm:$0x3] %v865_v11  ;;  %78 = vst [vmem:[#allocation1 + $0x78] sm:$0x3] %v854_v12  ;;  %v855_v13 = vld [vmem:[%s1270_s0 + $0x1c] sm:$0x3] }
   0xa   :  { %v856_v14 = vld [vmem:[%s1270_s0 + $0x1a] sm:$0x3]  ;;  %v857_v15 = vld [vmem:[%s1270_s0 + $0x18] sm:$0x3]  ;;  %83 = vst [vmem:[#allocation1 + $0x70] sm:$0x3] %v855_v13 }
   0xb   :  { %88 = vst [vmem:[#allocation1 + $0x68] sm:$0x3] %v856_v14  ;;  %93 = vst [vmem:[#allocation1 + $0x60] sm:$0x3] %v857_v15  ;;  %v850_v16 = vld [vmem:[%s1270_s0 + $0x26] sm:$0x3] }
   0xc   :  { %v851_v17 = vld [vmem:[%s1270_s0 + $0x24] sm:$0x3]  ;;  %v852_v18 = vld [vmem:[%s1270_s0 + $0x22] sm:$0x3]  ;;  %58 = vst [vmem:[#allocation1 + $0x98] sm:$0x3] %v850_v16 }
   0xd   :  { %63 = vst [vmem:[#allocation1 + $0x90] sm:$0x3] %v851_v17  ;;  %68 = vst [vmem:[#allocation1 + $0x88] sm:$0x3] %v852_v18  ;;  %v853_v19 = vld [vmem:[%s1270_s0 + $0x20] sm:$0x3] }
   0xe   :  { %v846_v20 = vld [vmem:[%s1270_s0 + $0x2e] sm:$0x3]  ;;  %v847_v21 = vld [vmem:[%s1270_s0 + $0x2c] sm:$0x3]  ;;  %v154_v22 = vld [vmem:[#allocation1 + $0x8] sm:$0x3]  }
   0xf   :  { %v159_v23 = vld [vmem:[#allocation1 + $0x10] sm:$0x3]   ;;  %v164_v24 = vld [vmem:[#allocation1 + $0x18] sm:$0x3]   ;;  %73 = vst [vmem:[#allocation1 + $0x80] sm:$0x3] %v853_v19 }
  0x10   :  { %38 = vst [vmem:[#allocation1 + $0xb8] sm:$0x3] %v846_v20  ;;  %43 = vst [vmem:[#allocation1 + $0xb0] sm:$0x3] %v847_v21  ;;  %v150_v25 = vld [vmem:[#allocation1] sm:$0x3]  }
  0x11   :  { %157 = vst.msk [vmem:[#allocation0 + $0x10] ss:$8 sm:$0x3] %vm151_vm0, %v154_v22   ;;  %162 = vst.msk [vmem:[#allocation0 + $0x20] ss:$8 sm:$0x3] %vm151_vm0, %v159_v23  }
  0x12   :  { %v298_v26 = vld.sshfl [vmem:[#allocation1] sm:$0xff pattern:$0x99999810]   ;;  %167 = vst.msk [vmem:[#allocation0 + $0x30] ss:$8 sm:$0x3] %vm151_vm0, %v164_v24  }
  0x13   :  { %152 = vst.msk [vmem:[#allocation0] ss:$8 sm:$0x3] %vm151_vm0, %v150_v25   ;;  %v300_v27 = vld.sshfl [vmem:[#allocation1 + $0x10] sm:$0xff pattern:$0x98100000]  }
  0x14   :  { %v194_v28 = vld [vmem:[#allocation1 + $0x48] sm:$0x3]   ;;  %v302_v29 = vsel %vm301_vm1, %v300_v27, %v298_v26  ;;  %v189_v30 = vld [vmem:[#allocation1 + $0x40] sm:$0x3]   ;;  %v199_v31 = vld [vmem:[#allocation1 + $0x50] sm:$0x3]  }
  0x15   :  { %197 = vst.msk [vmem:[#allocation0 + $0x90] ss:$8 sm:$0x3] %vm151_vm0, %v194_v28   ;;  %v204_v32 = vld [vmem:[#allocation1 + $0x58] sm:$0x3]   ;;  %303 = vrot.lane.b32.xlu0 %v302_v29, %s929_s21 }
  0x16   :  { %192 = vst.msk [vmem:[#allocation0 + $0x80] ss:$8 sm:$0x3] %vm151_vm0, %v189_v30   ;;  %202 = vst.msk [vmem:[#allocation0 + $0xa0] ss:$8 sm:$0x3] %vm151_vm0, %v199_v31  }
  0x17   :  { %v324_v33 = vld.sshfl [vmem:[#allocation1 + $0x40] sm:$0xff pattern:$0x99999810]   ;;  %v326_v34 = vld.sshfl [vmem:[#allocation1 + $0x50] sm:$0xff pattern:$0x98100000]  }
  0x18   :  { %207 = vst.msk [vmem:[#allocation0 + $0xb0] ss:$8 sm:$0x3] %vm151_vm0, %v204_v32   ;;  %v328_v35 = vsel %vm301_vm1, %v326_v34, %v324_v33  ;;  %v169_v36 = vld [vmem:[#allocation1 + $0x20] sm:$0x3]  }
  0x19   :  { %v174_v37 = vld [vmem:[#allocation1 + $0x28] sm:$0x3]   ;;  %v179_v38 = vld [vmem:[#allocation1 + $0x30] sm:$0x3]   ;;  %329 = vrot.lane.b32.xlu1 %v328_v35, %s929_s21  ;;  %v184_v42 = vld [vmem:[#allocation1 + $0x38] sm:$0x3]  }
  0x1a   :  { %172 = vst.msk [vmem:[#allocation0 + $0x40] ss:$8 sm:$0x3] %vm151_vm0, %v169_v36   ;;  %177 = vst.msk [vmem:[#allocation0 + $0x50] ss:$8 sm:$0x3] %vm151_vm0, %v174_v37  }
  0x1b   :  { %182 = vst.msk [vmem:[#allocation0 + $0x60] ss:$8 sm:$0x3] %vm151_vm0, %v179_v38   ;;  %v311_v39 = vld.sshfl [vmem:[#allocation1 + $0x20] sm:$0xff pattern:$0x99999810]  }
  0x1c   :  { %v313_v40 = vld.sshfl [vmem:[#allocation1 + $0x30] sm:$0xff pattern:$0x98100000]   ;;  %v209_v43 = vld [vmem:[#allocation1 + $0x60] sm:$0x3]  }
  0x1d   :  { %v315_v41 = vsel %vm301_vm1, %v313_v40, %v311_v39  ;;  %v214_v44 = vld [vmem:[#allocation1 + $0x68] sm:$0x3]   ;;  %187 = vst.msk [vmem:[#allocation0 + $0x70] ss:$8 sm:$0x3] %vm151_vm0, %v184_v42  }
  0x1e   :  { %316 = vrot.lane.b32.xlu0 %v315_v41, %s929_s21  ;;  %212 = vst.msk [vmem:[#allocation0 + $0xc0] ss:$8 sm:$0x3] %vm151_vm0, %v209_v43   ;;  %217 = vst.msk [vmem:[#allocation0 + $0xd0] ss:$8 sm:$0x3] %vm151_vm0, %v214_v44  }
  0x1f   :  { %v219_v45 = vld [vmem:[#allocation1 + $0x70] sm:$0x3]   ;;  %v337_v46 = vld.sshfl [vmem:[#allocation1 + $0x60] sm:$0xff pattern:$0x99999810]  }
  0x20   :  { %222 = vst.msk [vmem:[#allocation0 + $0xe0] ss:$8 sm:$0x3] %vm151_vm0, %v219_v45   ;;  %v339_v47 = vld.sshfl [vmem:[#allocation1 + $0x70] sm:$0xff pattern:$0x98100000]  }
  0x21   :  { %v224_v48 = vld [vmem:[#allocation1 + $0x78] sm:$0x3]   ;;  %v341_v49 = vsel %vm301_vm1, %v339_v47, %v337_v46  ;;  %v229_v50 = vld [vmem:[#allocation1 + $0x80] sm:$0x3]   ;;  %v234_v51 = vld [vmem:[#allocation1 + $0x88] sm:$0x3]  }
  0x22   :  { %227 = vst.msk [vmem:[#allocation0 + $0xf0] ss:$8 sm:$0x3] %vm151_vm0, %v224_v48   ;;  %v239_v52 = vld [vmem:[#allocation1 + $0x90] sm:$0x3]   ;;  %342 = vrot.lane.b32.xlu1 %v341_v49, %s929_s21 }
  0x23   :  { %232 = vst.msk [vmem:[#allocation0 + $0x100] ss:$8 sm:$0x3] %vm151_vm0, %v229_v50   ;;  %237 = vst.msk [vmem:[#allocation0 + $0x110] ss:$8 sm:$0x3] %vm151_vm0, %v234_v51  }
  0x24   :  { %242 = vst.msk [vmem:[#allocation0 + $0x120] ss:$8 sm:$0x3] %vm151_vm0, %v239_v52   ;;  %v350_v53 = vld.sshfl [vmem:[#allocation1 + $0x80] sm:$0xff pattern:$0x99999810]  }
  0x25   :  { %v352_v54 = vld.sshfl [vmem:[#allocation1 + $0x90] sm:$0xff pattern:$0x98100000]   ;;  %v848_v57 = vld [vmem:[%s1270_s0 + $0x2a] sm:$0x3] }
  0x26   :  { %v354_v55 = vsel %vm301_vm1, %v352_v54, %v350_v53  ;;  %v244_v56 = vld [vmem:[#allocation1 + $0x98] sm:$0x3]   ;;  %v849_v58 = vld [vmem:[%s1270_s0 + $0x28] sm:$0x3]  ;;  %48 = vst [vmem:[#allocation1 + $0xa8] sm:$0x3] %v848_v57 }
  0x27   :  { %355 = vrot.lane.b32.xlu0 %v354_v55, %s929_s21  ;;  %247 = vst.msk [vmem:[#allocation0 + $0x130] ss:$8 sm:$0x3] %vm151_vm0, %v244_v56   ;;  %53 = vst [vmem:[#allocation1 + $0xa0] sm:$0x3] %v849_v58 }
  0x28   :  { %v259_v59 = vld [vmem:[#allocation1 + $0xb0] sm:$0x3]   ;;  %v264_v60 = vld [vmem:[#allocation1 + $0xb8] sm:$0x3]   ;;  %v842_v61 = vld [vmem:[%s1270_s0 + $0x36] sm:$0x3] }
  0x29   :  { %262 = vst.msk [vmem:[#allocation0 + $0x160] ss:$8 sm:$0x3] %vm151_vm0, %v259_v59   ;;  %v843_v62 = vld [vmem:[%s1270_s0 + $0x34] sm:$0x3] }
  0x2a   :  { %267 = vst.msk [vmem:[#allocation0 + $0x170] ss:$8 sm:$0x3] %vm151_vm0, %v264_v60   ;;  %18 = vst [vmem:[#allocation1 + $0xd8] sm:$0x3] %v842_v61 }
  0x2b   :  { %23 = vst [vmem:[#allocation1 + $0xd0] sm:$0x3] %v843_v62  ;;  %v844_v63 = vld [vmem:[%s1270_s0 + $0x32] sm:$0x3]  ;;  %v845_v0 = vld [vmem:[%s1270_s0 + $0x30] sm:$0x3] }
  0x2c   :  { %v840_v1 = vld [vmem:[%s1270_s0 + $0x3a] sm:$0x3]  ;;  %28 = vst [vmem:[#allocation1 + $0xc8] sm:$0x3] %v844_v63  ;;  %33 = vst [vmem:[#allocation1 + $0xc0] sm:$0x3] %v845_v0 }
  0x2d   :  { %8 = vst [vmem:[#allocation1 + $0xe8] sm:$0x3] %v840_v1  ;;  %v841_v2 = vld [vmem:[%s1270_s0 + $0x38] sm:$0x3]  ;;  %v254_v5 = vld [vmem:[#allocation1 + $0xa8] sm:$0x3]  }
  0x2e   :  { %13 = vst [vmem:[#allocation1 + $0xe0] sm:$0x3] %v841_v2  ;;  %v365_v3 = vld.sshfl [vmem:[#allocation1 + $0xb0] sm:$0xff pattern:$0x98100000]  }
  0x2f   :  { %v249_v4 = vld [vmem:[#allocation1 + $0xa0] sm:$0x3]   ;;  %257 = vst.msk [vmem:[#allocation0 + $0x150] ss:$8 sm:$0x3] %vm151_vm0, %v254_v5  }
  0x30   :  { %252 = vst.msk [vmem:[#allocation0 + $0x140] ss:$8 sm:$0x3] %vm151_vm0, %v249_v4   ;;  %v363_v6 = vld.sshfl [vmem:[#allocation1 + $0xa0] sm:$0xff pattern:$0x99999810]  }
  0x31   :  { %v367_v7 = vsel %vm301_vm1, %v365_v3, %v363_v6  ;;  %v284_v12 = vld [vmem:[#allocation1 + $0xd8] sm:$0x3]  }
  0x32   :  { %v279_v8 = vld [vmem:[#allocation1 + $0xd0] sm:$0x3]   ;;  %368 = vrot.lane.b32.xlu1 %v367_v7, %s929_s21  ;;  %287 = vst.msk [vmem:[#allocation0 + $0x1b0] ss:$8 sm:$0x3] %vm151_vm0, %v284_v12  }
  0x33   :  { %v378_v9 = vld.sshfl [vmem:[#allocation1 + $0xd0] sm:$0xff pattern:$0x98100000]   ;;  %v269_v10 = vld [vmem:[#allocation1 + $0xc0] sm:$0x3]  }
  0x34   :  { %v274_v11 = vld [vmem:[#allocation1 + $0xc8] sm:$0x3]   ;;  %282 = vst.msk [vmem:[#allocation0 + $0x1a0] ss:$8 sm:$0x3] %vm151_vm0, %v279_v8  }
  0x35   :  { %272 = vst.msk [vmem:[#allocation0 + $0x180] ss:$8 sm:$0x3] %vm151_vm0, %v269_v10   ;;  %277 = vst.msk [vmem:[#allocation0 + $0x190] ss:$8 sm:$0x3] %vm151_vm0, %v274_v11  }
  0x36   :  { %v376_v13 = vld.sshfl [vmem:[#allocation1 + $0xc0] sm:$0xff pattern:$0x99999810]  }
  0x37   :  { %v289_v14 = vld [vmem:[#allocation1 + $0xe0] sm:$0x3]   ;;  %v380_v15 = vsel %vm301_vm1, %v378_v9, %v376_v13  ;;  %v294_v17 = vld [vmem:[#allocation1 + $0xe8] sm:$0x3]  }
  0x38   :  { %292 = vst.msk [vmem:[#allocation0 + $0x1c0] ss:$8 sm:$0x3] %vm151_vm0, %v289_v14   ;;  %v389_v16 = vld.sshfl [vmem:[#allocation1 + $0xe0] sm:$0xff pattern:$0x99999810]   ;;  %381 = vrot.lane.b32.xlu0 %v380_v15, %s929_s21 }
  0x39   :  { %297 = vst.msk [vmem:[#allocation0 + $0x1d0] ss:$8 sm:$0x3] %vm151_vm0, %v294_v17   ;;  %390 = vrot.lane.b32.xlu1 %v389_v16, %s929_s21 }
  0x87   :  { %v304_v18 = vpop.permute.xlu0 %303  }
  0x88   :  { %307 = vst.msk [vmem:[#allocation0 + $0x1] ss:$8 sm:$0xf] %vm151_vm0, %v304_v18   ;;  %309 = vst.msk [vmem:[#allocation0 + $0x1] ss:$8 sm:$0xf0] %vm151_vm0, %v304_v18  }
  0x8b   :  { %v330_v19 = vpop.permute.xlu1 %329  }
  0x8c   :  { %333 = vst.msk [vmem:[#allocation0 + $0x81] ss:$8 sm:$0xf] %vm151_vm0, %v330_v19   ;;  %335 = vst.msk [vmem:[#allocation0 + $0x81] ss:$8 sm:$0xf0] %vm151_vm0, %v330_v19  }
  0x8f   :  { %v398_v22 = vld [vmem:[#allocation0] sm:$0x3]  ;;  %v402_v23 = vld [vmem:[#allocation0 + $0x8] sm:$0x3]  ;;  %v407_v24 = vld [vmem:[#allocation0 + $0x10] sm:$0x3] }
  0x90   :  { %v317_v20 = vpop.permute.xlu0 %316   ;;  %v413_v25 = vld [vmem:[#allocation0 + $0x18] sm:$0x3]  ;;  %v419_v26 = vld [vmem:[#allocation0 + $0x20] sm:$0x3]  ;;  %v425_v27 = vld [vmem:[#allocation0 + $0x28] sm:$0x3] }
  0x91   :  { %320 = vst.msk [vmem:[#allocation0 + $0x41] ss:$8 sm:$0xf] %vm151_vm0, %v317_v20   ;;  %322 = vst.msk [vmem:[#allocation0 + $0x41] ss:$8 sm:$0xf0] %vm151_vm0, %v317_v20  }
  0x92   :  { %400 = vst [vmem:[%s1271_s1] sm:$0x3] %v398_v22  ;;  %869 = vst [vmem:[%s1271_s1 + $0x2] sm:$0x3] %v402_v23  ;;  %v431_v29 = vld [vmem:[#allocation0 + $0x30] sm:$0x3] }
  0x93   :  { %870 = vst [vmem:[%s1271_s1 + $0x4] sm:$0x3] %v407_v24  ;;  %v437_v30 = vld [vmem:[#allocation0 + $0x38] sm:$0x3]  ;;  %871 = vst [vmem:[%s1271_s1 + $0x6] sm:$0x3] %v413_v25 }
  0x94   :  { %v343_v21 = vpop.permute.xlu1 %342   ;;  %872 = vst [vmem:[%s1271_s1 + $0x8] sm:$0x3] %v419_v26  ;;  %873 = vst [vmem:[%s1271_s1 + $0xa] sm:$0x3] %v425_v27  ;;  %v491_v31 = vld [vmem:[#allocation0 + $0x80] sm:$0x3] }
  0x95   :  { %346 = vst.msk [vmem:[#allocation0 + $0xc1] ss:$8 sm:$0xf] %vm151_vm0, %v343_v21   ;;  %348 = vst.msk [vmem:[#allocation0 + $0xc1] ss:$8 sm:$0xf0] %vm151_vm0, %v343_v21  }
  0x96   :  { %874 = vst [vmem:[%s1271_s1 + $0xc] sm:$0x3] %v431_v29  ;;  %875 = vst [vmem:[%s1271_s1 + $0xe] sm:$0x3] %v437_v30  ;;  %v497_v32 = vld [vmem:[#allocation0 + $0x88] sm:$0x3] }
  0x97   :  { %v503_v33 = vld [vmem:[#allocation0 + $0x90] sm:$0x3]  ;;  %v509_v34 = vld [vmem:[#allocation0 + $0x98] sm:$0x3]  ;;  %884 = vst [vmem:[%s1271_s1 + $0x20] sm:$0x3] %v491_v31 }
  0x98   :  { %v515_v35 = vld [vmem:[#allocation0 + $0xa0] sm:$0x3]  ;;  %v521_v36 = vld [vmem:[#allocation0 + $0xa8] sm:$0x3]  ;;  %v527_v37 = vld [vmem:[#allocation0 + $0xb0] sm:$0x3] }
  0x99   :  { %v356_v28 = vpop.permute.xlu0 %355   ;;  %885 = vst [vmem:[%s1271_s1 + $0x22] sm:$0x3] %v497_v32  ;;  %886 = vst [vmem:[%s1271_s1 + $0x24] sm:$0x3] %v503_v33  ;;  %v533_v38 = vld [vmem:[#allocation0 + $0xb8] sm:$0x3] }
  0x9a   :  { %359 = vst.msk [vmem:[#allocation0 + $0x101] ss:$8 sm:$0xf] %vm151_vm0, %v356_v28   ;;  %361 = vst.msk [vmem:[#allocation0 + $0x101] ss:$8 sm:$0xf0] %vm151_vm0, %v356_v28  }
  0x9b   :  { %887 = vst [vmem:[%s1271_s1 + $0x26] sm:$0x3] %v509_v34  ;;  %v443_v39 = vld [vmem:[#allocation0 + $0x40] sm:$0x3]  ;;  %v449_v40 = vld [vmem:[#allocation0 + $0x48] sm:$0x3] }
  0x9c   :  { %888 = vst [vmem:[%s1271_s1 + $0x28] sm:$0x3] %v515_v35  ;;  %889 = vst [vmem:[%s1271_s1 + $0x2a] sm:$0x3] %v521_v36  ;;  %v455_v41 = vld [vmem:[#allocation0 + $0x50] sm:$0x3] }
  0x9d   :  { %890 = vst [vmem:[%s1271_s1 + $0x2c] sm:$0x3] %v527_v37  ;;  %v461_v42 = vld [vmem:[#allocation0 + $0x58] sm:$0x3]  ;;  %v467_v43 = vld [vmem:[#allocation0 + $0x60] sm:$0x3] }
  0x9e   :  { %891 = vst [vmem:[%s1271_s1 + $0x2e] sm:$0x3] %v533_v38  ;;  %876 = vst [vmem:[%s1271_s1 + $0x10] sm:$0x3] %v443_v39  ;;  %v473_v44 = vld [vmem:[#allocation0 + $0x68] sm:$0x3] }
  0x9f   :  { %877 = vst [vmem:[%s1271_s1 + $0x12] sm:$0x3] %v449_v40  ;;  %v479_v45 = vld [vmem:[#allocation0 + $0x70] sm:$0x3]  ;;  %v485_v46 = vld [vmem:[#allocation0 + $0x78] sm:$0x3] }
  0xa0   :  { %878 = vst [vmem:[%s1271_s1 + $0x14] sm:$0x3] %v455_v41  ;;  %879 = vst [vmem:[%s1271_s1 + $0x16] sm:$0x3] %v461_v42  ;;  %v539_v47 = vld [vmem:[#allocation0 + $0xc0] sm:$0x3] }
  0xa1   :  { %880 = vst [vmem:[%s1271_s1 + $0x18] sm:$0x3] %v467_v43  ;;  %881 = vst [vmem:[%s1271_s1 + $0x1a] sm:$0x3] %v473_v44  ;;  %v545_v48 = vld [vmem:[#allocation0 + $0xc8] sm:$0x3] }
  0xa2   :  { %882 = vst [vmem:[%s1271_s1 + $0x1c] sm:$0x3] %v479_v45  ;;  %883 = vst [vmem:[%s1271_s1 + $0x1e] sm:$0x3] %v485_v46  ;;  %v551_v49 = vld [vmem:[#allocation0 + $0xd0] sm:$0x3] }
  0xa3   :  { %v557_v50 = vld [vmem:[#allocation0 + $0xd8] sm:$0x3]  ;;  %v563_v51 = vld [vmem:[#allocation0 + $0xe0] sm:$0x3]  ;;  %v569_v52 = vld [vmem:[#allocation0 + $0xe8] sm:$0x3] }
  0xa4   :  { %892 = vst [vmem:[%s1271_s1 + $0x30] sm:$0x3] %v539_v47  ;;  %893 = vst [vmem:[%s1271_s1 + $0x32] sm:$0x3] %v545_v48  ;;  %v575_v53 = vld [vmem:[#allocation0 + $0xf0] sm:$0x3]  ;;  %v369_v59 = vpop.permute.xlu1 %368  }
  0xa5   :  { %894 = vst [vmem:[%s1271_s1 + $0x34] sm:$0x3] %v551_v49  ;;  %v581_v54 = vld [vmem:[#allocation0 + $0xf8] sm:$0x3]  ;;  %895 = vst [vmem:[%s1271_s1 + $0x36] sm:$0x3] %v557_v50 }
  0xa6   :  { %896 = vst [vmem:[%s1271_s1 + $0x38] sm:$0x3] %v563_v51  ;;  %897 = vst [vmem:[%s1271_s1 + $0x3a] sm:$0x3] %v569_v52  ;;  %v587_v55 = vld [vmem:[#allocation0 + $0x100] sm:$0x3] }
  0xa7   :  { %898 = vst [vmem:[%s1271_s1 + $0x3c] sm:$0x3] %v575_v53  ;;  %899 = vst [vmem:[%s1271_s1 + $0x3e] sm:$0x3] %v581_v54  ;;  %v593_v56 = vld [vmem:[#allocation0 + $0x108] sm:$0x3] }
  0xa8   :  { %v599_v57 = vld [vmem:[#allocation0 + $0x110] sm:$0x3]  ;;  %v605_v58 = vld [vmem:[#allocation0 + $0x118] sm:$0x3]  ;;  %900 = vst [vmem:[%s1271_s1 + $0x40] sm:$0x3] %v587_v55 }
  0xa9   :  { %v611_v60 = vld [vmem:[#allocation0 + $0x120] sm:$0x3]  ;;  %v617_v61 = vld [vmem:[#allocation0 + $0x128] sm:$0x3]  ;;  %v623_v62 = vld [vmem:[#allocation0 + $0x130] sm:$0x3] }
  0xaa   :  { %372 = vst.msk [vmem:[#allocation0 + $0x141] ss:$8 sm:$0xf] %vm151_vm0, %v369_v59   ;;  %374 = vst.msk [vmem:[#allocation0 + $0x141] ss:$8 sm:$0xf0] %vm151_vm0, %v369_v59   ;;  %v382_v0 = vpop.permute.xlu0 %381  }
  0xab   :  { %901 = vst [vmem:[%s1271_s1 + $0x42] sm:$0x3] %v593_v56  ;;  %902 = vst [vmem:[%s1271_s1 + $0x44] sm:$0x3] %v599_v57  ;;  %v629_v63 = vld [vmem:[#allocation0 + $0x138] sm:$0x3]  ;;  %v391_v1 = vpop.permute.xlu1 %390  }
  0xac   :  { %903 = vst [vmem:[%s1271_s1 + $0x46] sm:$0x3] %v605_v58  ;;  %904 = vst [vmem:[%s1271_s1 + $0x48] sm:$0x3] %v611_v60 }
  0xad   :  { %905 = vst [vmem:[%s1271_s1 + $0x4a] sm:$0x3] %v617_v61  ;;  %906 = vst [vmem:[%s1271_s1 + $0x4c] sm:$0x3] %v623_v62 }
  0xae   :  { %907 = vst [vmem:[%s1271_s1 + $0x4e] sm:$0x3] %v629_v63  ;;  %385 = vst.msk [vmem:[#allocation0 + $0x181] ss:$8 sm:$0xf] %vm151_vm0, %v382_v0  }
  0xaf   :  { %387 = vst.msk [vmem:[#allocation0 + $0x181] ss:$8 sm:$0xf0] %vm151_vm0, %v382_v0   ;;  %394 = vst.msk [vmem:[#allocation0 + $0x1c1] ss:$8 sm:$0xf] %vm151_vm0, %v391_v1  }
  0xb1   :  { %v635_v2 = vld [vmem:[#allocation0 + $0x140] sm:$0x3]  ;;  %v641_v3 = vld [vmem:[#allocation0 + $0x148] sm:$0x3]  ;;  %v647_v4 = vld [vmem:[#allocation0 + $0x150] sm:$0x3] }
  0xb2   :  { %v653_v5 = vld [vmem:[#allocation0 + $0x158] sm:$0x3]  ;;  %v659_v6 = vld [vmem:[#allocation0 + $0x160] sm:$0x3]  ;;  %v665_v7 = vld [vmem:[#allocation0 + $0x168] sm:$0x3] }
  0xb3   :  { %908 = vst [vmem:[%s1271_s1 + $0x50] sm:$0x3] %v635_v2  ;;  %909 = vst [vmem:[%s1271_s1 + $0x52] sm:$0x3] %v641_v3  ;;  %v671_v8 = vld [vmem:[#allocation0 + $0x170] sm:$0x3] }
  0xb4   :  { %910 = vst [vmem:[%s1271_s1 + $0x54] sm:$0x3] %v647_v4  ;;  %v677_v9 = vld [vmem:[#allocation0 + $0x178] sm:$0x3]  ;;  %911 = vst [vmem:[%s1271_s1 + $0x56] sm:$0x3] %v653_v5 }
  0xb5   :  { %912 = vst [vmem:[%s1271_s1 + $0x58] sm:$0x3] %v659_v6  ;;  %913 = vst [vmem:[%s1271_s1 + $0x5a] sm:$0x3] %v665_v7  ;;  %v683_v10 = vld [vmem:[#allocation0 + $0x180] sm:$0x3] }
  0xb6   :  { %914 = vst [vmem:[%s1271_s1 + $0x5c] sm:$0x3] %v671_v8  ;;  %915 = vst [vmem:[%s1271_s1 + $0x5e] sm:$0x3] %v677_v9  ;;  %v689_v11 = vld [vmem:[#allocation0 + $0x188] sm:$0x3] }
  0xb7   :  { %v695_v12 = vld [vmem:[#allocation0 + $0x190] sm:$0x3]  ;;  %v701_v13 = vld [vmem:[#allocation0 + $0x198] sm:$0x3]  ;;  %v707_v14 = vld [vmem:[#allocation0 + $0x1a0] sm:$0x3] }
  0xb8   :  { %v713_v15 = vld [vmem:[#allocation0 + $0x1a8] sm:$0x3]  ;;  %916 = vst [vmem:[%s1271_s1 + $0x60] sm:$0x3] %v683_v10  ;;  %917 = vst [vmem:[%s1271_s1 + $0x62] sm:$0x3] %v689_v11 }
  0xb9   :  { %918 = vst [vmem:[%s1271_s1 + $0x64] sm:$0x3] %v695_v12  ;;  %v719_v16 = vld [vmem:[#allocation0 + $0x1b0] sm:$0x3]  ;;  %v725_v17 = vld [vmem:[#allocation0 + $0x1b8] sm:$0x3] }
  0xba   :  { %919 = vst [vmem:[%s1271_s1 + $0x66] sm:$0x3] %v701_v13  ;;  %920 = vst [vmem:[%s1271_s1 + $0x68] sm:$0x3] %v707_v14  ;;  %v731_v18 = vld [vmem:[#allocation0 + $0x1c0] sm:$0x3] }
  0xbb   :  { %921 = vst [vmem:[%s1271_s1 + $0x6a] sm:$0x3] %v713_v15  ;;  %922 = vst [vmem:[%s1271_s1 + $0x6c] sm:$0x3] %v719_v16  ;;  %v737_v19 = vld [vmem:[#allocation0 + $0x1c8] sm:$0x3] }
  0xbc   :  { %923 = vst [vmem:[%s1271_s1 + $0x6e] sm:$0x3] %v725_v17  ;;  %924 = vst [vmem:[%s1271_s1 + $0x70] sm:$0x3] %v731_v18  ;;  %v743_v20 = vld [vmem:[#allocation0 + $0x1d0] sm:$0x3] }
  0xbd   :  { %v749_v21 = vld [vmem:[#allocation0 + $0x1d8] sm:$0x3]  ;;  %925 = vst [vmem:[%s1271_s1 + $0x72] sm:$0x3] %v737_v19  ;;  %926 = vst [vmem:[%s1271_s1 + $0x74] sm:$0x3] %v743_v20 }
  0xbe   :  { %927 = vst [vmem:[%s1271_s1 + $0x76] sm:$0x3] %v749_v21 }

// kernel: squeeze.9
= control target key start
LH: loop header
LB: loop body
LE: loop exit
PB: predicated region body
PF: predicated region fallthrough
CT: control target
= control target key end

     0   :  { %vm226_vm0 = vcmask 121856   ;;  %vm451_vm1 = vcmask 1047556   ;;  %s1551_s21 = smov 113   ;;  %s2118_s0 = inlined_call_operand.vmem [shape: f32[2,1,45,45], index: 0, kind: input, shape index: {}]   ;;  %s2119_s1 = inlined_call_operand.vmem [shape: f32[2,3,15,3,15], index: 1, kind: output, shape index: {}]  }
   0x1   :  { %v1457_v0 = vld [vmem:[%s2118_s0 + $0x6] sm:$0x3]  ;;  %v1458_v1 = vld [vmem:[%s2118_s0 + $0x4] sm:$0x3]  ;;  %v1459_v2 = vld [vmem:[%s2118_s0 + $0x2] sm:$0x3] }
   0x2   :  { %213 = vst [vmem:[#allocation1 + $0x18] sm:$0x3] %v1457_v0  ;;  %218 = vst [vmem:[#allocation1 + $0x10] sm:$0x3] %v1458_v1  ;;  %v223_v3 = vld [vmem:[%s2118_s0] sm:$0x3] }
   0x3   :  { %222 = vst [vmem:[#allocation1 + $0x8] sm:$0x3] %v1459_v2  ;;  %224 = vst [vmem:[#allocation1] sm:$0x3] %v223_v3  ;;  %v1449_v4 = vld [vmem:[%s2118_s0 + $0x16] sm:$0x3] }
   0x4   :  { %v1450_v5 = vld [vmem:[%s2118_s0 + $0x14] sm:$0x3]  ;;  %v1451_v6 = vld [vmem:[%s2118_s0 + $0x12] sm:$0x3]  ;;  %173 = vst [vmem:[#allocation1 + $0x58] sm:$0x3] %v1449_v4 }
   0x5   :  { %178 = vst [vmem:[#allocation1 + $0x50] sm:$0x3] %v1450_v5  ;;  %183 = vst [vmem:[#allocation1 + $0x48] sm:$0x3] %v1451_v6  ;;  %v1452_v7 = vld [vmem:[%s2118_s0 + $0x10] sm:$0x3] }
   0x6   :  { %v1453_v8 = vld [vmem:[%s2118_s0 + $0xe] sm:$0x3]  ;;  %v1454_v9 = vld [vmem:[%s2118_s0 + $0xc] sm:$0x3]  ;;  %188 = vst [vmem:[#allocation1 + $0x40] sm:$0x3] %v1452_v7 }
   0x7   :  { %193 = vst [vmem:[#allocation1 + $0x38] sm:$0x3] %v1453_v8  ;;  %198 = vst [vmem:[#allocation1 + $0x30] sm:$0x3] %v1454_v9  ;;  %v1455_v10 = vld [vmem:[%s2118_s0 + $0xa] sm:$0x3] }
   0x8   :  { %v1456_v11 = vld [vmem:[%s2118_s0 + $0x8] sm:$0x3]  ;;  %v1445_v12 = vld [vmem:[%s2118_s0 + $0x1e] sm:$0x3]  ;;  %203 = vst [vmem:[#allocation1 + $0x28] sm:$0x3] %v1455_v10 }
   0x9   :  { %208 = vst [vmem:[#allocation1 + $0x20] sm:$0x3] %v1456_v11  ;;  %153 = vst [vmem:[#allocation1 + $0x78] sm:$0x3] %v1445_v12  ;;  %v1446_v13 = vld [vmem:[%s2118_s0 + $0x1c] sm:$0x3] }
   0xa   :  { %v1447_v14 = vld [vmem:[%s2118_s0 + $0x1a] sm:$0x3]  ;;  %v1448_v15 = vld [vmem:[%s2118_s0 + $0x18] sm:$0x3]  ;;  %158 = vst [vmem:[#allocation1 + $0x70] sm:$0x3] %v1446_v13 }
   0xb   :  { %163 = vst [vmem:[#allocation1 + $0x68] sm:$0x3] %v1447_v14  ;;  %168 = vst [vmem:[#allocation1 + $0x60] sm:$0x3] %v1448_v15  ;;  %v1441_v16 = vld [vmem:[%s2118_s0 + $0x26] sm:$0x3] }
   0xc   :  { %v1442_v17 = vld [vmem:[%s2118_s0 + $0x24] sm:$0x3]  ;;  %v1443_v18 = vld [vmem:[%s2118_s0 + $0x22] sm:$0x3]  ;;  %133 = vst [vmem:[#allocation1 + $0x98] sm:$0x3] %v1441_v16 }
   0xd   :  { %138 = vst [vmem:[#allocation1 + $0x90] sm:$0x3] %v1442_v17  ;;  %143 = vst [vmem:[#allocation1 + $0x88] sm:$0x3] %v1443_v18  ;;  %v1444_v19 = vld [vmem:[%s2118_s0 + $0x20] sm:$0x3] }
   0xe   :  { %v1437_v20 = vld [vmem:[%s2118_s0 + $0x2e] sm:$0x3]  ;;  %v1438_v21 = vld [vmem:[%s2118_s0 + $0x2c] sm:$0x3]  ;;  %v229_v22 = vld [vmem:[#allocation1 + $0x8] sm:$0x3]  }
   0xf   :  { %v234_v23 = vld [vmem:[#allocation1 + $0x10] sm:$0x3]   ;;  %v239_v24 = vld [vmem:[#allocation1 + $0x18] sm:$0x3]   ;;  %148 = vst [vmem:[#allocation1 + $0x80] sm:$0x3] %v1444_v19 }
  0x10   :  { %113 = vst [vmem:[#allocation1 + $0xb8] sm:$0x3] %v1437_v20  ;;  %118 = vst [vmem:[#allocation1 + $0xb0] sm:$0x3] %v1438_v21  ;;  %v225_v25 = vld [vmem:[#allocation1] sm:$0x3]  }
  0x11   :  { %232 = vst.msk [vmem:[#allocation0 + $0x10] ss:$8 sm:$0x3] %vm226_vm0, %v229_v22   ;;  %237 = vst.msk [vmem:[#allocation0 + $0x20] ss:$8 sm:$0x3] %vm226_vm0, %v234_v23  }
  0x12   :  { %v448_v26 = vld.sshfl [vmem:[#allocation1] sm:$0xff pattern:$0x99999810]   ;;  %242 = vst.msk [vmem:[#allocation0 + $0x30] ss:$8 sm:$0x3] %vm226_vm0, %v239_v24  }
  0x13   :  { %227 = vst.msk [vmem:[#allocation0] ss:$8 sm:$0x3] %vm226_vm0, %v225_v25   ;;  %v450_v27 = vld.sshfl [vmem:[#allocation1 + $0x10] sm:$0xff pattern:$0x98100000]  }
  0x14   :  { %v269_v28 = vld [vmem:[#allocation1 + $0x48] sm:$0x3]   ;;  %v1634_v29 = vsel %vm451_vm1, %v450_v27, %v448_v26  ;;  %v264_v30 = vld [vmem:[#allocation1 + $0x40] sm:$0x3]   ;;  %v274_v31 = vld [vmem:[#allocation1 + $0x50] sm:$0x3]  }
  0x15   :  { %272 = vst.msk [vmem:[#allocation0 + $0x90] ss:$8 sm:$0x3] %vm226_vm0, %v269_v28   ;;  %v279_v32 = vld [vmem:[#allocation1 + $0x58] sm:$0x3]   ;;  %453 = vrot.lane.b32.xlu0 %v1634_v29, %s1551_s21 }
  0x16   :  { %267 = vst.msk [vmem:[#allocation0 + $0x80] ss:$8 sm:$0x3] %vm226_vm0, %v264_v30   ;;  %277 = vst.msk [vmem:[#allocation0 + $0xa0] ss:$8 sm:$0x3] %vm226_vm0, %v274_v31  }
  0x17   :  { %v474_v33 = vld.sshfl [vmem:[#allocation1 + $0x40] sm:$0xff pattern:$0x99999810]   ;;  %v476_v34 = vld.sshfl [vmem:[#allocation1 + $0x50] sm:$0xff pattern:$0x98100000]  }
  0x18   :  { %282 = vst.msk [vmem:[#allocation0 + $0xb0] ss:$8 sm:$0x3] %vm226_vm0, %v279_v32   ;;  %v1643_v35 = vsel %vm451_vm1, %v476_v34, %v474_v33  ;;  %v244_v36 = vld [vmem:[#allocation1 + $0x20] sm:$0x3]  }
  0x19   :  { %v249_v37 = vld [vmem:[#allocation1 + $0x28] sm:$0x3]   ;;  %v284_v38 = vld [vmem:[#allocation1 + $0x60] sm:$0x3]   ;;  %479 = vrot.lane.b32.xlu1 %v1643_v35, %s1551_s21  ;;  %v314_v45 = vld [vmem:[#allocation1 + $0x90] sm:$0x3]  }
  0x1a   :  { %247 = vst.msk [vmem:[#allocation0 + $0x40] ss:$8 sm:$0x3] %vm226_vm0, %v244_v36   ;;  %252 = vst.msk [vmem:[#allocation0 + $0x50] ss:$8 sm:$0x3] %vm226_vm0, %v249_v37  }
  0x1b   :  { %v461_v39 = vld.sshfl [vmem:[#allocation1 + $0x20] sm:$0xff pattern:$0x99999810]   ;;  %v463_v40 = vld.sshfl [vmem:[#allocation1 + $0x30] sm:$0xff pattern:$0x98100000]  }
  0x1c   :  { %287 = vst.msk [vmem:[#allocation0 + $0xc0] ss:$8 sm:$0x3] %vm226_vm0, %v284_v38   ;;  %v1651_v41 = vsel %vm451_vm1, %v463_v40, %v461_v39  ;;  %v289_v42 = vld [vmem:[#allocation1 + $0x68] sm:$0x3]  }
  0x1d   :  { %v487_v43 = vld.sshfl [vmem:[#allocation1 + $0x60] sm:$0xff pattern:$0x99999810]   ;;  %466 = vrot.lane.b32.xlu0 %v1651_v41, %s1551_s21  ;;  %292 = vst.msk [vmem:[#allocation0 + $0xd0] ss:$8 sm:$0x3] %vm226_vm0, %v289_v42  }
  0x1e   :  { %v489_v44 = vld.sshfl [vmem:[#allocation1 + $0x70] sm:$0xff pattern:$0x98100000]   ;;  %317 = vst.msk [vmem:[#allocation0 + $0x120] ss:$8 sm:$0x3] %vm226_vm0, %v314_v45  }
  0x1f   :  { %v1657_v46 = vsel %vm451_vm1, %v489_v44, %v487_v43  ;;  %v500_v47 = vld.sshfl [vmem:[#allocation1 + $0x80] sm:$0xff pattern:$0x99999810]   ;;  %v502_v48 = vld.sshfl [vmem:[#allocation1 + $0x90] sm:$0xff pattern:$0x98100000]  }
  0x20   :  { %492 = vrot.lane.b32.xlu1 %v1657_v46, %s1551_s21  ;;  %v1663_v49 = vsel %vm451_vm1, %v502_v48, %v500_v47  ;;  %v319_v50 = vld [vmem:[#allocation1 + $0x98] sm:$0x3]   ;;  %v1439_v51 = vld [vmem:[%s2118_s0 + $0x2a] sm:$0x3]  ;;  %v334_v53 = vld [vmem:[#allocation1 + $0xb0] sm:$0x3]  }
  0x21   :  { %v1440_v52 = vld [vmem:[%s2118_s0 + $0x28] sm:$0x3]  ;;  %322 = vst.msk [vmem:[#allocation0 + $0x130] ss:$8 sm:$0x3] %vm226_vm0, %v319_v50   ;;  %505 = vrot.lane.b32.xlu0 %v1663_v49, %s1551_s21 }
  0x22   :  { %123 = vst [vmem:[#allocation1 + $0xa8] sm:$0x3] %v1439_v51  ;;  %128 = vst [vmem:[#allocation1 + $0xa0] sm:$0x3] %v1440_v52  ;;  %v339_v54 = vld [vmem:[#allocation1 + $0xb8] sm:$0x3]  }
  0x23   :  { %337 = vst.msk [vmem:[#allocation0 + $0x160] ss:$8 sm:$0x3] %vm226_vm0, %v334_v53   ;;  %v1433_v55 = vld [vmem:[%s2118_s0 + $0x36] sm:$0x3] }
  0x24   :  { %v1434_v56 = vld [vmem:[%s2118_s0 + $0x34] sm:$0x3]  ;;  %342 = vst.msk [vmem:[#allocation0 + $0x170] ss:$8 sm:$0x3] %vm226_vm0, %v339_v54  }
  0x25   :  { %93 = vst [vmem:[#allocation1 + $0xd8] sm:$0x3] %v1433_v55  ;;  %98 = vst [vmem:[#allocation1 + $0xd0] sm:$0x3] %v1434_v56  ;;  %v1435_v57 = vld [vmem:[%s2118_s0 + $0x32] sm:$0x3] }
  0x26   :  { %v1436_v58 = vld [vmem:[%s2118_s0 + $0x30] sm:$0x3]  ;;  %v1429_v59 = vld [vmem:[%s2118_s0 + $0x3e] sm:$0x3]  ;;  %103 = vst [vmem:[#allocation1 + $0xc8] sm:$0x3] %v1435_v57 }
  0x27   :  { %v515_v60 = vld.sshfl [vmem:[#allocation1 + $0xb0] sm:$0xff pattern:$0x98100000]   ;;  %108 = vst [vmem:[#allocation1 + $0xc0] sm:$0x3] %v1436_v58 }
  0x28   :  { %73 = vst [vmem:[#allocation1 + $0xf8] sm:$0x3] %v1429_v59  ;;  %v1430_v61 = vld [vmem:[%s2118_s0 + $0x3c] sm:$0x3]  ;;  %v1431_v62 = vld [vmem:[%s2118_s0 + $0x3a] sm:$0x3] }
  0x29   :  { %v1432_v63 = vld [vmem:[%s2118_s0 + $0x38] sm:$0x3]  ;;  %78 = vst [vmem:[#allocation1 + $0xf0] sm:$0x3] %v1430_v61  ;;  %83 = vst [vmem:[#allocation1 + $0xe8] sm:$0x3] %v1431_v62 }
  0x2a   :  { %88 = vst [vmem:[#allocation1 + $0xe0] sm:$0x3] %v1432_v63  ;;  %v1425_v0 = vld [vmem:[%s2118_s0 + $0x46] sm:$0x3]  ;;  %v1426_v1 = vld [vmem:[%s2118_s0 + $0x44] sm:$0x3] }
  0x2b   :  { %v1427_v2 = vld [vmem:[%s2118_s0 + $0x42] sm:$0x3]  ;;  %53 = vst [vmem:[#allocation1 + $0x118] sm:$0x3] %v1425_v0  ;;  %58 = vst [vmem:[#allocation1 + $0x110] sm:$0x3] %v1426_v1 }
  0x2c   :  { %63 = vst [vmem:[#allocation1 + $0x108] sm:$0x3] %v1427_v2  ;;  %v1428_v3 = vld [vmem:[%s2118_s0 + $0x40] sm:$0x3]  ;;  %v1421_v4 = vld [vmem:[%s2118_s0 + $0x4e] sm:$0x3] }
  0x2d   :  { %v1422_v5 = vld [vmem:[%s2118_s0 + $0x4c] sm:$0x3]  ;;  %68 = vst [vmem:[#allocation1 + $0x100] sm:$0x3] %v1428_v3  ;;  %33 = vst [vmem:[#allocation1 + $0x138] sm:$0x3] %v1421_v4 }
  0x2e   :  { %38 = vst [vmem:[#allocation1 + $0x130] sm:$0x3] %v1422_v5  ;;  %v1423_v6 = vld [vmem:[%s2118_s0 + $0x4a] sm:$0x3]  ;;  %v1424_v7 = vld [vmem:[%s2118_s0 + $0x48] sm:$0x3] }
  0x2f   :  { %v1417_v8 = vld [vmem:[%s2118_s0 + $0x56] sm:$0x3]  ;;  %v513_v9 = vld.sshfl [vmem:[#allocation1 + $0xa0] sm:$0xff pattern:$0x99999810]  }
  0x30   :  { %43 = vst [vmem:[#allocation1 + $0x128] sm:$0x3] %v1423_v6  ;;  %48 = vst [vmem:[#allocation1 + $0x120] sm:$0x3] %v1424_v7  ;;  %v1418_v10 = vld [vmem:[%s2118_s0 + $0x54] sm:$0x3]  ;;  %v1731_v11 = vsel %vm451_vm1, %v515_v60, %v513_v9 }
  0x31   :  { %13 = vst [vmem:[#allocation1 + $0x158] sm:$0x3] %v1417_v8  ;;  %18 = vst [vmem:[#allocation1 + $0x150] sm:$0x3] %v1418_v10  ;;  %v1419_v12 = vld [vmem:[%s2118_s0 + $0x52] sm:$0x3]  ;;  %518 = vrot.lane.b32.xlu1 %v1731_v11, %s1551_s21 }
  0x32   :  { %v1420_v13 = vld [vmem:[%s2118_s0 + $0x50] sm:$0x3]  ;;  %v1416_v14 = vld [vmem:[%s2118_s0 + $0x58] sm:$0x3]  ;;  %v354_v15 = vld [vmem:[#allocation1 + $0xd0] sm:$0x3]  }
  0x33   :  { %v528_v16 = vld.sshfl [vmem:[#allocation1 + $0xd0] sm:$0xff pattern:$0x98100000]   ;;  %23 = vst [vmem:[#allocation1 + $0x148] sm:$0x3] %v1419_v12  ;;  %s1552_s0 = smov 98  }
  0x34   :  { %28 = vst [vmem:[#allocation1 + $0x140] sm:$0x3] %v1420_v13  ;;  %8 = vst [vmem:[#allocation1 + $0x160] sm:$0x3] %v1416_v14  ;;  %v359_v18 = vld [vmem:[#allocation1 + $0xd8] sm:$0x3]  }
  0x35   :  { %357 = vst.msk [vmem:[#allocation0 + $0x1a0] ss:$8 sm:$0x3] %vm226_vm0, %v354_v15   ;;  %v526_v17 = vld.sshfl [vmem:[#allocation1 + $0xc0] sm:$0xff pattern:$0x99999810]  }
  0x36   :  { %v1746_v19 = vsel %vm451_vm1, %v528_v16, %v526_v17  ;;  %362 = vst.msk [vmem:[#allocation0 + $0x1b0] ss:$8 sm:$0x3] %vm226_vm0, %v359_v18   ;;  %v539_v20 = vld.sshfl [vmem:[#allocation1 + $0xe0] sm:$0xff pattern:$0x99999810]  }
  0x37   :  { %v541_v21 = vld.sshfl [vmem:[#allocation1 + $0xf0] sm:$0xff pattern:$0x98100000]   ;;  %531 = vrot.lane.b32.xlu0 %v1746_v19, %s1551_s21  ;;  %v552_v25 = vld.sshfl [vmem:[#allocation1 + $0x100] sm:$0xff pattern:$0x99999810]  }
  0x38   :  { %v1752_v22 = vsel %vm451_vm1, %v541_v21, %v539_v20  ;;  %v554_v23 = vld.sshfl [vmem:[#allocation1 + $0x110] sm:$0xff pattern:$0x98100000]   ;;  %v404_v28 = vld [vmem:[#allocation1 + $0x120] sm:$0x3]  }
  0x39   :  { %v254_v24 = vld [vmem:[#allocation1 + $0x30] sm:$0x3]   ;;  %544 = vrot.lane.b32.xlu1 %v1752_v22, %s1551_s21  ;;  %v1758_v27 = vsel %vm451_vm1, %v554_v23, %v552_v25  ;;  %v409_v30 = vld [vmem:[#allocation1 + $0x128] sm:$0x3]   ;;  %v419_v31 = vld [vmem:[#allocation1 + $0x138] sm:$0x3]  }
  0x3a   :  { %v414_v26 = vld [vmem:[#allocation1 + $0x130] sm:$0x3]   ;;  %257 = vst.msk [vmem:[#allocation0 + $0x60] ss:$8 sm:$0x3] %vm226_vm0, %v254_v24  }
  0x3b   :  { %417 = vst.msk [vmem:[#allocation0 + $0x260] ss:$8 sm:$0x3] %vm226_vm0, %v414_v26   ;;  %407 = vst.msk [vmem:[#allocation0 + $0x240] ss:$8 sm:$0x3] %vm226_vm0, %v404_v28   ;;  %557 = vrot.lane.b32.xlu0 %v1758_v27, %s1551_s21 }
  0x3c   :  { %412 = vst.msk [vmem:[#allocation0 + $0x250] ss:$8 sm:$0x3] %vm226_vm0, %v409_v30   ;;  %v565_v32 = vld.sshfl [vmem:[#allocation1 + $0x120] sm:$0xff pattern:$0x99999810]  }
  0x3d   :  { %v567_v33 = vld.sshfl [vmem:[#allocation1 + $0x130] sm:$0xff pattern:$0x98100000]   ;;  %422 = vst.msk [vmem:[#allocation0 + $0x270] ss:$8 sm:$0x3] %vm226_vm0, %v419_v31  }
  0x3e   :  { %v569_v34 = vsel %vm451_vm1, %v567_v33, %v565_v32  ;;  %v434_v36 = vld [vmem:[#allocation1 + $0x150] sm:$0x3]   ;;  %v578_v37 = vld.sshfl [vmem:[#allocation1 + $0x140] sm:$0xff pattern:$0x99999810]  }
  0x3f   :  { %570 = vrot.lane.b32.xlu1 %v569_v34, %s1551_s21  ;;  %437 = vst.msk [vmem:[#allocation0 + $0x2a0] ss:$8 sm:$0x3] %vm226_vm0, %v434_v36   ;;  %v580_v38 = vld.sshfl [vmem:[#allocation1 + $0x150] sm:$0xff pattern:$0x98100000]  }
  0x40   :  { %v439_v39 = vld [vmem:[#allocation1 + $0x158] sm:$0x3]   ;;  %v582_v40 = vsel %vm451_vm1, %v580_v38, %v578_v37  ;;  %v591_v42 = vld [vmem:[#allocation1 + $0x160] sm:$0x3]   ;;  %v294_v44 = vld [vmem:[#allocation1 + $0x70] sm:$0x3]  }
  0x41   :  { %442 = vst.msk [vmem:[#allocation0 + $0x2b0] ss:$8 sm:$0x3] %vm226_vm0, %v439_v39   ;;  %v259_v43 = vld [vmem:[#allocation1 + $0x38] sm:$0x3]   ;;  %583 = vrot.lane.b32.xlu0 %v582_v40, %s1551_s21 }
  0x42   :  { %262 = vst.msk [vmem:[#allocation0 + $0x70] ss:$8 sm:$0x3] %vm226_vm0, %v259_v43   ;;  %297 = vst.msk [vmem:[#allocation0 + $0xe0] ss:$8 sm:$0x3] %vm226_vm0, %v294_v44  }
  0x43   :  { %v299_v45 = vld [vmem:[#allocation1 + $0x78] sm:$0x3]   ;;  %v304_v47 = vld [vmem:[#allocation1 + $0x80] sm:$0x3]   ;;  %v309_v48 = vld [vmem:[#allocation1 + $0x88] sm:$0x3]   ;;  %592 = vrot.lane.b32.xlu1 %v591_v42, %s1551_s21 }
  0x44   :  { %302 = vst.msk [vmem:[#allocation0 + $0xf0] ss:$8 sm:$0x3] %vm226_vm0, %v299_v45   ;;  %307 = vst.msk [vmem:[#allocation0 + $0x100] ss:$8 sm:$0x3] %vm226_vm0, %v304_v47  }
  0x45   :  { %312 = vst.msk [vmem:[#allocation0 + $0x110] ss:$8 sm:$0x3] %vm226_vm0, %v309_v48   ;;  %v324_v50 = vld [vmem:[#allocation1 + $0xa0] sm:$0x3]   ;;  %602 = vrot.lane.b32.xlu0 %v1634_v29, %s1552_s0 }
  0x46   :  { %v329_v51 = vld [vmem:[#allocation1 + $0xa8] sm:$0x3]   ;;  %v344_v52 = vld [vmem:[#allocation1 + $0xc0] sm:$0x3]   ;;  %v374_v56 = vld [vmem:[#allocation1 + $0xf0] sm:$0x3]  }
  0x47   :  { %327 = vst.msk [vmem:[#allocation0 + $0x140] ss:$8 sm:$0x3] %vm226_vm0, %v324_v50   ;;  %332 = vst.msk [vmem:[#allocation0 + $0x150] ss:$8 sm:$0x3] %vm226_vm0, %v329_v51   ;;  %615 = vrot.lane.b32.xlu1 %v1651_v41, %s1552_s0 }
  0x48   :  { %347 = vst.msk [vmem:[#allocation0 + $0x180] ss:$8 sm:$0x3] %vm226_vm0, %v344_v52   ;;  %v349_v53 = vld [vmem:[#allocation1 + $0xc8] sm:$0x3]  }
  0x49   :  { %v364_v54 = vld [vmem:[#allocation1 + $0xe0] sm:$0x3]   ;;  %v369_v55 = vld [vmem:[#allocation1 + $0xe8] sm:$0x3]   ;;  %v379_v57 = vld [vmem:[#allocation1 + $0xf8] sm:$0x3]   ;;  %628 = vrot.lane.b32.xlu0 %v1643_v35, %s1552_s0 }
  0x4a   :  { %352 = vst.msk [vmem:[#allocation0 + $0x190] ss:$8 sm:$0x3] %vm226_vm0, %v349_v53   ;;  %367 = vst.msk [vmem:[#allocation0 + $0x1c0] ss:$8 sm:$0x3] %vm226_vm0, %v364_v54  }
  0x4b   :  { %372 = vst.msk [vmem:[#allocation0 + $0x1d0] ss:$8 sm:$0x3] %vm226_vm0, %v369_v55   ;;  %v384_v58 = vld [vmem:[#allocation1 + $0x100] sm:$0x3]   ;;  %641 = vrot.lane.b32.xlu1 %v1657_v46, %s1552_s0 }
  0x4c   :  { %377 = vst.msk [vmem:[#allocation0 + $0x1e0] ss:$8 sm:$0x3] %vm226_vm0, %v374_v56   ;;  %382 = vst.msk [vmem:[#allocation0 + $0x1f0] ss:$8 sm:$0x3] %vm226_vm0, %v379_v57  }
  0x4d   :  { %387 = vst.msk [vmem:[#allocation0 + $0x200] ss:$8 sm:$0x3] %vm226_vm0, %v384_v58   ;;  %v389_v59 = vld [vmem:[#allocation1 + $0x108] sm:$0x3]   ;;  %654 = vrot.lane.b32.xlu0 %v1663_v49, %s1552_s0 }
  0x4e   :  { %v394_v60 = vld [vmem:[#allocation1 + $0x110] sm:$0x3]   ;;  %v399_v61 = vld [vmem:[#allocation1 + $0x118] sm:$0x3]   ;;  %v424_v29 = vld [vmem:[#allocation1 + $0x140] sm:$0x3]  }
  0x4f   :  { %392 = vst.msk [vmem:[#allocation0 + $0x210] ss:$8 sm:$0x3] %vm226_vm0, %v389_v59   ;;  %397 = vst.msk [vmem:[#allocation0 + $0x220] ss:$8 sm:$0x3] %vm226_vm0, %v394_v60   ;;  %667 = vrot.lane.b32.xlu1 %v1731_v11, %s1552_s0 }
  0x50   :  { %402 = vst.msk [vmem:[#allocation0 + $0x230] ss:$8 sm:$0x3] %vm226_vm0, %v399_v61   ;;  %v429_v62 = vld [vmem:[#allocation1 + $0x148] sm:$0x3]  }
  0x51   :  { %427 = vst.msk [vmem:[#allocation0 + $0x280] ss:$8 sm:$0x3] %vm226_vm0, %v424_v29   ;;  %432 = vst.msk [vmem:[#allocation0 + $0x290] ss:$8 sm:$0x3] %vm226_vm0, %v429_v62   ;;  %680 = vrot.lane.b32.xlu0 %v1746_v19, %s1552_s0 }
  0x52   :  { %v444_v35 = vld [vmem:[#allocation1 + $0x160] sm:$0x3]  }
  0x53   :  { %693 = vrot.lane.b32.xlu1 %v1752_v22, %s1552_s0  ;;  %447 = vst.msk [vmem:[#allocation0 + $0x2c0] ss:$8 sm:$0x3] %vm226_vm0, %v444_v35   ;;  %v740_v41 = vld [vmem:[#allocation1 + $0x160] sm:$0x3]  }
  0x55   :  { %706 = vrot.lane.b32.xlu0 %v1758_v27, %s1552_s0 }
  0x57   :  { %719 = vrot.lane.b32.xlu1 %v569_v34, %s1552_s0 }
  0x59   :  { %732 = vrot.lane.b32.xlu0 %v582_v40, %s1552_s0 }
  0x5b   :  { %741 = vrot.lane.b32.xlu1 %v740_v41, %s1552_s0 }
  0x87   :  { %v454_v46 = vpop.permute.xlu0 %453  }
  0x88   :  { %457 = vst.msk [vmem:[#allocation0 + $0x1] ss:$8 sm:$0xf] %vm226_vm0, %v454_v46   ;;  %459 = vst.msk [vmem:[#allocation0 + $0x1] ss:$8 sm:$0xf0] %vm226_vm0, %v454_v46  }
  0x8b   :  { %v480_v49 = vpop.permute.xlu1 %479  }
  0x8c   :  { %483 = vst.msk [vmem:[#allocation0 + $0x81] ss:$8 sm:$0xf] %vm226_vm0, %v480_v49   ;;  %485 = vst.msk [vmem:[#allocation0 + $0x81] ss:$8 sm:$0xf0] %vm226_vm0, %v480_v49  }
  0x8f   :  { %v467_v63 = vpop.permute.xlu0 %466  }
  0x90   :  { %470 = vst.msk [vmem:[#allocation0 + $0x41] ss:$8 sm:$0xf] %vm226_vm0, %v467_v63   ;;  %472 = vst.msk [vmem:[#allocation0 + $0x41] ss:$8 sm:$0xf0] %vm226_vm0, %v467_v63  }
  0x92   :  { %v493_v0 = vpop.permute.xlu1 %492  }
  0x93   :  { %496 = vst.msk [vmem:[#allocation0 + $0xc1] ss:$8 sm:$0xf] %vm226_vm0, %v493_v0   ;;  %498 = vst.msk [vmem:[#allocation0 + $0xc1] ss:$8 sm:$0xf0] %vm226_vm0, %v493_v0   ;;  %v506_v1 = vpop.permute.xlu0 %505  }
  0x94   :  { %509 = vst.msk [vmem:[#allocation0 + $0x101] ss:$8 sm:$0xf] %vm226_vm0, %v506_v1   ;;  %511 = vst.msk [vmem:[#allocation0 + $0x101] ss:$8 sm:$0xf0] %vm226_vm0, %v506_v1  }
  0xa3   :  { %v519_v2 = vpop.permute.xlu1 %518  }
  0xa4   :  { %522 = vst.msk [vmem:[#allocation0 + $0x141] ss:$8 sm:$0xf] %vm226_vm0, %v519_v2   ;;  %524 = vst.msk [vmem:[#allocation0 + $0x141] ss:$8 sm:$0xf0] %vm226_vm0, %v519_v2  }
  0xa9   :  { %v532_v3 = vpop.permute.xlu0 %531  }
  0xaa   :  { %535 = vst.msk [vmem:[#allocation0 + $0x181] ss:$8 sm:$0xf] %vm226_vm0, %v532_v3   ;;  %537 = vst.msk [vmem:[#allocation0 + $0x181] ss:$8 sm:$0xf0] %vm226_vm0, %v532_v3  }
  0xab   :  { %v545_v4 = vpop.permute.xlu1 %544  }
  0xac   :  { %548 = vst.msk [vmem:[#allocation0 + $0x1c1] ss:$8 sm:$0xf] %vm226_vm0, %v545_v4   ;;  %550 = vst.msk [vmem:[#allocation0 + $0x1c1] ss:$8 sm:$0xf0] %vm226_vm0, %v545_v4  }
  0xad   :  { %v558_v5 = vpop.permute.xlu0 %557  }
  0xae   :  { %561 = vst.msk [vmem:[#allocation0 + $0x201] ss:$8 sm:$0xf] %vm226_vm0, %v558_v5   ;;  %563 = vst.msk [vmem:[#allocation0 + $0x201] ss:$8 sm:$0xf0] %vm226_vm0, %v558_v5  }
  0xb1   :  { %v571_v6 = vpop.permute.xlu1 %570  }
  0xb2   :  { %574 = vst.msk [vmem:[#allocation0 + $0x241] ss:$8 sm:$0xf] %vm226_vm0, %v571_v6   ;;  %576 = vst.msk [vmem:[#allocation0 + $0x241] ss:$8 sm:$0xf0] %vm226_vm0, %v571_v6  }
  0xb3   :  { %v584_v7 = vpop.permute.xlu0 %583  }
  0xb4   :  { %587 = vst.msk [vmem:[#allocation0 + $0x281] ss:$8 sm:$0xf] %vm226_vm0, %v584_v7   ;;  %589 = vst.msk [vmem:[#allocation0 + $0x281] ss:$8 sm:$0xf0] %vm226_vm0, %v584_v7  }
  0xb5   :  { %v593_v8 = vpop.permute.xlu1 %592  }
  0xb6   :  { %596 = vst.msk [vmem:[#allocation0 + $0x2c1] ss:$8 sm:$0x3] %vm226_vm0, %v593_v8  }
  0xb7   :  { %v603_v9 = vpop.permute.xlu0 %602  }
  0xb8   :  { %606 = vst.msk [vmem:[#allocation0 + $0x2] ss:$8 sm:$0xf] %vm226_vm0, %v603_v9   ;;  %608 = vst.msk [vmem:[#allocation0 + $0x2] ss:$8 sm:$0xf0] %vm226_vm0, %v603_v9  }
  0xb9   :  { %v616_v10 = vpop.permute.xlu1 %615  }
  0xba   :  { %619 = vst.msk [vmem:[#allocation0 + $0x42] ss:$8 sm:$0xf] %vm226_vm0, %v616_v10   ;;  %621 = vst.msk [vmem:[#allocation0 + $0x42] ss:$8 sm:$0xf0] %vm226_vm0, %v616_v10  }
  0xbb   :  { %v629_v11 = vpop.permute.xlu0 %628  }
  0xbc   :  { %632 = vst.msk [vmem:[#allocation0 + $0x82] ss:$8 sm:$0xf] %vm226_vm0, %v629_v11   ;;  %634 = vst.msk [vmem:[#allocation0 + $0x82] ss:$8 sm:$0xf0] %vm226_vm0, %v629_v11  }
  0xbd   :  { %v642_v12 = vpop.permute.xlu1 %641  }
  0xbe   :  { %645 = vst.msk [vmem:[#allocation0 + $0xc2] ss:$8 sm:$0xf] %vm226_vm0, %v642_v12   ;;  %647 = vst.msk [vmem:[#allocation0 + $0xc2] ss:$8 sm:$0xf0] %vm226_vm0, %v642_v12  }
  0xbf   :  { %v749_v13 = vld [vmem:[#allocation0] sm:$0xf]  ;;  %v753_v14 = vld [vmem:[#allocation0 + $0x8] sm:$0xf]  ;;  %v758_v15 = vld [vmem:[#allocation0 + $0x10] sm:$0xf]  ;;  %v655_v16 = vpop.permute.xlu0 %654  }
  0xc0   :  { %v764_v17 = vld [vmem:[#allocation0 + $0x18] sm:$0xf]  ;;  %v770_v18 = vld [vmem:[#allocation0 + $0x20] sm:$0xf]  ;;  %v776_v19 = vld [vmem:[#allocation0 + $0x28] sm:$0xf] }
  0xc1   :  { %751 = vst [vmem:[%s2119_s1] sm:$0xf] %v749_v13  ;;  %1460 = vst [vmem:[%s2119_s1 + $0x4] sm:$0xf] %v753_v14  ;;  %v668_v20 = vpop.permute.xlu1 %667   ;;  %v782_v21 = vld [vmem:[#allocation0 + $0x30] sm:$0xf] }
  0xc2   :  { %1461 = vst [vmem:[%s2119_s1 + $0x8] sm:$0xf] %v758_v15  ;;  %658 = vst.msk [vmem:[#allocation0 + $0x102] ss:$8 sm:$0xf] %vm226_vm0, %v655_v16  }
  0xc3   :  { %660 = vst.msk [vmem:[#allocation0 + $0x102] ss:$8 sm:$0xf0] %vm226_vm0, %v655_v16   ;;  %v788_v22 = vld [vmem:[#allocation0 + $0x38] sm:$0xf]  ;;  %v681_v31 = vpop.permute.xlu0 %680  }
  0xc4   :  { %v818_v23 = vld [vmem:[#allocation0 + $0x60] sm:$0xf]  ;;  %1462 = vst [vmem:[%s2119_s1 + $0xc] sm:$0xf] %v764_v17  ;;  %1463 = vst [vmem:[%s2119_s1 + $0x10] sm:$0xf] %v770_v18 }
  0xc5   :  { %1464 = vst [vmem:[%s2119_s1 + $0x14] sm:$0xf] %v776_v19  ;;  %671 = vst.msk [vmem:[#allocation0 + $0x142] ss:$8 sm:$0xf] %vm226_vm0, %v668_v20   ;;  %v694_v36 = vpop.permute.xlu1 %693  }
  0xc6   :  { %673 = vst.msk [vmem:[#allocation0 + $0x142] ss:$8 sm:$0xf0] %vm226_vm0, %v668_v20   ;;  %1471 = vst [vmem:[%s2119_s1 + $0x30] sm:$0xf] %v818_v23 }
  0xc7   :  { %v824_v24 = vld [vmem:[#allocation0 + $0x68] sm:$0xf]  ;;  %v830_v25 = vld [vmem:[#allocation0 + $0x70] sm:$0xf]  ;;  %v836_v26 = vld [vmem:[#allocation0 + $0x78] sm:$0xf]  ;;  %v707_v48 = vpop.permute.xlu0 %706  }
  0xc8   :  { %1465 = vst [vmem:[%s2119_s1 + $0x18] sm:$0xf] %v782_v21  ;;  %1466 = vst [vmem:[%s2119_s1 + $0x1c] sm:$0xf] %v788_v22  ;;  %v794_v27 = vld [vmem:[#allocation0 + $0x40] sm:$0xf] }
  0xc9   :  { %1472 = vst [vmem:[%s2119_s1 + $0x34] sm:$0xf] %v824_v24  ;;  %1473 = vst [vmem:[%s2119_s1 + $0x38] sm:$0xf] %v830_v25  ;;  %v800_v28 = vld [vmem:[#allocation0 + $0x48] sm:$0xf]  ;;  %v720_v53 = vpop.permute.xlu1 %719  }
  0xca   :  { %1474 = vst [vmem:[%s2119_s1 + $0x3c] sm:$0xf] %v836_v26  ;;  %v806_v30 = vld [vmem:[#allocation0 + $0x50] sm:$0xf]  ;;  %v812_v32 = vld [vmem:[#allocation0 + $0x58] sm:$0xf] }
  0xcb   :  { %v866_v33 = vld [vmem:[#allocation0 + $0xa0] sm:$0xf]  ;;  %v872_v34 = vld [vmem:[#allocation0 + $0xa8] sm:$0xf]  ;;  %1467 = vst [vmem:[%s2119_s1 + $0x20] sm:$0xf] %v794_v27  ;;  %v733_v62 = vpop.permute.xlu0 %732  }
  0xcc   :  { %1468 = vst [vmem:[%s2119_s1 + $0x24] sm:$0xf] %v800_v28  ;;  %1469 = vst [vmem:[%s2119_s1 + $0x28] sm:$0xf] %v806_v30  ;;  %v878_v37 = vld [vmem:[#allocation0 + $0xb0] sm:$0xf] }
  0xcd   :  { %684 = vst.msk [vmem:[#allocation0 + $0x182] ss:$8 sm:$0xf] %vm226_vm0, %v681_v31   ;;  %686 = vst.msk [vmem:[#allocation0 + $0x182] ss:$8 sm:$0xf0] %vm226_vm0, %v681_v31   ;;  %v742_v49 = vpop.permute.xlu1 %741  }
  0xce   :  { %1479 = vst [vmem:[%s2119_s1 + $0x50] sm:$0xf] %v866_v33  ;;  %1480 = vst [vmem:[%s2119_s1 + $0x54] sm:$0xf] %v872_v34  ;;  %v884_v38 = vld [vmem:[#allocation0 + $0xb8] sm:$0xf] }
  0xcf   :  { %1470 = vst [vmem:[%s2119_s1 + $0x2c] sm:$0xf] %v812_v32  ;;  %v842_v39 = vld [vmem:[#allocation0 + $0x80] sm:$0xf]  ;;  %1481 = vst [vmem:[%s2119_s1 + $0x58] sm:$0xf] %v878_v37 }
  0xd0   :  { %697 = vst.msk [vmem:[#allocation0 + $0x1c2] ss:$8 sm:$0xf] %vm226_vm0, %v694_v36   ;;  %699 = vst.msk [vmem:[#allocation0 + $0x1c2] ss:$8 sm:$0xf0] %vm226_vm0, %v694_v36  }
  0xd1   :  { %1482 = vst [vmem:[%s2119_s1 + $0x5c] sm:$0xf] %v884_v38  ;;  %v848_v40 = vld [vmem:[#allocation0 + $0x88] sm:$0xf]  ;;  %v854_v42 = vld [vmem:[#allocation0 + $0x90] sm:$0xf] }
  0xd2   :  { %v860_v43 = vld [vmem:[#allocation0 + $0x98] sm:$0xf]  ;;  %1475 = vst [vmem:[%s2119_s1 + $0x40] sm:$0xf] %v842_v39  ;;  %v914_v44 = vld [vmem:[#allocation0 + $0xe0] sm:$0xf] }
  0xd3   :  { %v920_v45 = vld [vmem:[#allocation0 + $0xe8] sm:$0xf]  ;;  %v926_v47 = vld [vmem:[#allocation0 + $0xf0] sm:$0xf]  ;;  %1476 = vst [vmem:[%s2119_s1 + $0x44] sm:$0xf] %v848_v40 }
  0xd4   :  { %1477 = vst [vmem:[%s2119_s1 + $0x48] sm:$0xf] %v854_v42  ;;  %1478 = vst [vmem:[%s2119_s1 + $0x4c] sm:$0xf] %v860_v43  ;;  %v932_v50 = vld [vmem:[#allocation0 + $0xf8] sm:$0xf] }
  0xd5   :  { %1487 = vst [vmem:[%s2119_s1 + $0x70] sm:$0xf] %v914_v44  ;;  %1488 = vst [vmem:[%s2119_s1 + $0x74] sm:$0xf] %v920_v45  ;;  %v890_v51 = vld [vmem:[#allocation0 + $0xc0] sm:$0xf] }
  0xd6   :  { %1489 = vst [vmem:[%s2119_s1 + $0x78] sm:$0xf] %v926_v47  ;;  %v896_v52 = vld [vmem:[#allocation0 + $0xc8] sm:$0xf]  ;;  %1490 = vst [vmem:[%s2119_s1 + $0x7c] sm:$0xf] %v932_v50 }
  0xd7   :  { %710 = vst.msk [vmem:[#allocation0 + $0x202] ss:$8 sm:$0xf] %vm226_vm0, %v707_v48   ;;  %712 = vst.msk [vmem:[#allocation0 + $0x202] ss:$8 sm:$0xf0] %vm226_vm0, %v707_v48  }
  0xd8   :  { %v902_v54 = vld [vmem:[#allocation0 + $0xd0] sm:$0xf]  ;;  %v908_v55 = vld [vmem:[#allocation0 + $0xd8] sm:$0xf]  ;;  %v962_v56 = vld [vmem:[#allocation0 + $0x120] sm:$0xf] }
  0xd9   :  { %1483 = vst [vmem:[%s2119_s1 + $0x60] sm:$0xf] %v890_v51  ;;  %1484 = vst [vmem:[%s2119_s1 + $0x64] sm:$0xf] %v896_v52  ;;  %v968_v57 = vld [vmem:[#allocation0 + $0x128] sm:$0xf] }
  0xda   :  { %723 = vst.msk [vmem:[#allocation0 + $0x242] ss:$8 sm:$0xf] %vm226_vm0, %v720_v53   ;;  %725 = vst.msk [vmem:[#allocation0 + $0x242] ss:$8 sm:$0xf0] %vm226_vm0, %v720_v53  }
  0xdb   :  { %1495 = vst [vmem:[%s2119_s1 + $0x90] sm:$0xf] %v962_v56  ;;  %v974_v58 = vld [vmem:[#allocation0 + $0x130] sm:$0xf]  ;;  %v980_v59 = vld [vmem:[#allocation0 + $0x138] sm:$0xf] }
  0xdc   :  { %1485 = vst [vmem:[%s2119_s1 + $0x68] sm:$0xf] %v902_v54  ;;  %1486 = vst [vmem:[%s2119_s1 + $0x6c] sm:$0xf] %v908_v55  ;;  %v938_v60 = vld [vmem:[#allocation0 + $0x100] sm:$0xf] }
  0xdd   :  { %1496 = vst [vmem:[%s2119_s1 + $0x94] sm:$0xf] %v968_v57  ;;  %1497 = vst [vmem:[%s2119_s1 + $0x98] sm:$0xf] %v974_v58  ;;  %v944_v61 = vld [vmem:[#allocation0 + $0x108] sm:$0xf] }
  0xde   :  { %1498 = vst [vmem:[%s2119_s1 + $0x9c] sm:$0xf] %v980_v59  ;;  %v950_v29 = vld [vmem:[#allocation0 + $0x110] sm:$0xf]  ;;  %v956_v35 = vld [vmem:[#allocation0 + $0x118] sm:$0xf] }
  0xdf   :  { %v1010_v41 = vld [vmem:[#allocation0 + $0x160] sm:$0xf]  ;;  %v1016_v46 = vld [vmem:[#allocation0 + $0x168] sm:$0xf]  ;;  %1491 = vst [vmem:[%s2119_s1 + $0x80] sm:$0xf] %v938_v60 }
  0xe0   :  { %1492 = vst [vmem:[%s2119_s1 + $0x84] sm:$0xf] %v944_v61  ;;  %1493 = vst [vmem:[%s2119_s1 + $0x88] sm:$0xf] %v950_v29  ;;  %v1022_v63 = vld [vmem:[#allocation0 + $0x170] sm:$0xf] }
  0xe1   :  { %736 = vst.msk [vmem:[#allocation0 + $0x282] ss:$8 sm:$0xf] %vm226_vm0, %v733_v62   ;;  %738 = vst.msk [vmem:[#allocation0 + $0x282] ss:$8 sm:$0xf0] %vm226_vm0, %v733_v62  }
  0xe2   :  { %1503 = vst [vmem:[%s2119_s1 + $0xb0] sm:$0xf] %v1010_v41  ;;  %1504 = vst [vmem:[%s2119_s1 + $0xb4] sm:$0xf] %v1016_v46  ;;  %v1028_v0 = vld [vmem:[#allocation0 + $0x178] sm:$0xf] }
  0xe3   :  { %1494 = vst [vmem:[%s2119_s1 + $0x8c] sm:$0xf] %v956_v35  ;;  %v986_v1 = vld [vmem:[#allocation0 + $0x140] sm:$0xf]  ;;  %1505 = vst [vmem:[%s2119_s1 + $0xb8] sm:$0xf] %v1022_v63 }
  0xe4   :  { %745 = vst.msk [vmem:[#allocation0 + $0x2c2] ss:$8 sm:$0x3] %vm226_vm0, %v742_v49   ;;  %1506 = vst [vmem:[%s2119_s1 + $0xbc] sm:$0xf] %v1028_v0 }
  0xe5   :  { %v992_v2 = vld [vmem:[#allocation0 + $0x148] sm:$0xf]  ;;  %v998_v3 = vld [vmem:[#allocation0 + $0x150] sm:$0xf]  ;;  %v1004_v4 = vld [vmem:[#allocation0 + $0x158] sm:$0xf] }
  0xe6   :  { %1499 = vst [vmem:[%s2119_s1 + $0xa0] sm:$0xf] %v986_v1  ;;  %1500 = vst [vmem:[%s2119_s1 + $0xa4] sm:$0xf] %v992_v2  ;;  %v1034_v5 = vld [vmem:[#allocation0 + $0x180] sm:$0xf] }
  0xe7   :  { %1501 = vst [vmem:[%s2119_s1 + $0xa8] sm:$0xf] %v998_v3  ;;  %1502 = vst [vmem:[%s2119_s1 + $0xac] sm:$0xf] %v1004_v4  ;;  %v1040_v6 = vld [vmem:[#allocation0 + $0x188] sm:$0xf] }
  0xe8   :  { %v1046_v7 = vld [vmem:[#allocation0 + $0x190] sm:$0xf]  ;;  %v1052_v8 = vld [vmem:[#allocation0 + $0x198] sm:$0xf]  ;;  %v1058_v9 = vld [vmem:[#allocation0 + $0x1a0] sm:$0xf] }
  0xe9   :  { %v1064_v10 = vld [vmem:[#allocation0 + $0x1a8] sm:$0xf]  ;;  %1507 = vst [vmem:[%s2119_s1 + $0xc0] sm:$0xf] %v1034_v5  ;;  %1508 = vst [vmem:[%s2119_s1 + $0xc4] sm:$0xf] %v1040_v6 }
  0xea   :  { %1509 = vst [vmem:[%s2119_s1 + $0xc8] sm:$0xf] %v1046_v7  ;;  %v1070_v11 = vld [vmem:[#allocation0 + $0x1b0] sm:$0xf]  ;;  %v1076_v12 = vld [vmem:[#allocation0 + $0x1b8] sm:$0xf] }
  0xeb   :  { %v1106_v13 = vld [vmem:[#allocation0 + $0x1e0] sm:$0xf]  ;;  %1510 = vst [vmem:[%s2119_s1 + $0xcc] sm:$0xf] %v1052_v8  ;;  %1511 = vst [vmem:[%s2119_s1 + $0xd0] sm:$0xf] %v1058_v9 }
  0xec   :  { %1512 = vst [vmem:[%s2119_s1 + $0xd4] sm:$0xf] %v1064_v10  ;;  %1519 = vst [vmem:[%s2119_s1 + $0xf0] sm:$0xf] %v1106_v13  ;;  %v1112_v14 = vld [vmem:[#allocation0 + $0x1e8] sm:$0xf] }
  0xed   :  { %v1118_v15 = vld [vmem:[#allocation0 + $0x1f0] sm:$0xf]  ;;  %v1124_v16 = vld [vmem:[#allocation0 + $0x1f8] sm:$0xf]  ;;  %1513 = vst [vmem:[%s2119_s1 + $0xd8] sm:$0xf] %v1070_v11 }
  0xee   :  { %1514 = vst [vmem:[%s2119_s1 + $0xdc] sm:$0xf] %v1076_v12  ;;  %1520 = vst [vmem:[%s2119_s1 + $0xf4] sm:$0xf] %v1112_v14  ;;  %v1082_v17 = vld [vmem:[#allocation0 + $0x1c0] sm:$0xf] }
  0xef   :  { %1521 = vst [vmem:[%s2119_s1 + $0xf8] sm:$0xf] %v1118_v15  ;;  %1522 = vst [vmem:[%s2119_s1 + $0xfc] sm:$0xf] %v1124_v16  ;;  %v1088_v18 = vld [vmem:[#allocation0 + $0x1c8] sm:$0xf] }
  0xf0   :  { %v1094_v19 = vld [vmem:[#allocation0 + $0x1d0] sm:$0xf]  ;;  %v1100_v20 = vld [vmem:[#allocation0 + $0x1d8] sm:$0xf]  ;;  %1515 = vst [vmem:[%s2119_s1 + $0xe0] sm:$0xf] %v1082_v17 }
  0xf1   :  { %1516 = vst [vmem:[%s2119_s1 + $0xe4] sm:$0xf] %v1088_v18  ;;  %1517 = vst [vmem:[%s2119_s1 + $0xe8] sm:$0xf] %v1094_v19  ;;  %v1130_v21 = vld [vmem:[#allocation0 + $0x200] sm:$0xf] }
  0xf2   :  { %v1136_v22 = vld [vmem:[#allocation0 + $0x208] sm:$0xf]  ;;  %1518 = vst [vmem:[%s2119_s1 + $0xec] sm:$0xf] %v1100_v20  ;;  %v1142_v23 = vld [vmem:[#allocation0 + $0x210] sm:$0xf] }
  0xf3   :  { %v1148_v24 = vld [vmem:[#allocation0 + $0x218] sm:$0xf]  ;;  %v1154_v25 = vld [vmem:[#allocation0 + $0x220] sm:$0xf]  ;;  %1523 = vst [vmem:[%s2119_s1 + $0x100] sm:$0xf] %v1130_v21 }
  0xf4   :  { %1524 = vst [vmem:[%s2119_s1 + $0x104] sm:$0xf] %v1136_v22  ;;  %v1160_v26 = vld [vmem:[#allocation0 + $0x228] sm:$0xf]  ;;  %v1166_v27 = vld [vmem:[#allocation0 + $0x230] sm:$0xf] }
  0xf5   :  { %v1172_v28 = vld [vmem:[#allocation0 + $0x238] sm:$0xf]  ;;  %1525 = vst [vmem:[%s2119_s1 + $0x108] sm:$0xf] %v1142_v23  ;;  %1526 = vst [vmem:[%s2119_s1 + $0x10c] sm:$0xf] %v1148_v24 }
  0xf6   :  { %1527 = vst [vmem:[%s2119_s1 + $0x110] sm:$0xf] %v1154_v25  ;;  %1528 = vst [vmem:[%s2119_s1 + $0x114] sm:$0xf] %v1160_v26  ;;  %v1178_v30 = vld [vmem:[#allocation0 + $0x240] sm:$0xf] }
  0xf7   :  { %1529 = vst [vmem:[%s2119_s1 + $0x118] sm:$0xf] %v1166_v27  ;;  %1530 = vst [vmem:[%s2119_s1 + $0x11c] sm:$0xf] %v1172_v28  ;;  %v1184_v31 = vld [vmem:[#allocation0 + $0x248] sm:$0xf] }
  0xf8   :  { %v1190_v32 = vld [vmem:[#allocation0 + $0x250] sm:$0xf]  ;;  %v1196_v33 = vld [vmem:[#allocation0 + $0x258] sm:$0xf]  ;;  %v1202_v34 = vld [vmem:[#allocation0 + $0x260] sm:$0xf] }
  0xf9   :  { %v1208_v36 = vld [vmem:[#allocation0 + $0x268] sm:$0xf]  ;;  %1531 = vst [vmem:[%s2119_s1 + $0x120] sm:$0xf] %v1178_v30  ;;  %1532 = vst [vmem:[%s2119_s1 + $0x124] sm:$0xf] %v1184_v31 }
  0xfa   :  { %1533 = vst [vmem:[%s2119_s1 + $0x128] sm:$0xf] %v1190_v32  ;;  %v1214_v37 = vld [vmem:[#allocation0 + $0x270] sm:$0xf]  ;;  %v1220_v38 = vld [vmem:[#allocation0 + $0x278] sm:$0xf] }
  0xfb   :  { %v1226_v39 = vld [vmem:[#allocation0 + $0x280] sm:$0xf]  ;;  %1534 = vst [vmem:[%s2119_s1 + $0x12c] sm:$0xf] %v1196_v33  ;;  %1535 = vst [vmem:[%s2119_s1 + $0x130] sm:$0xf] %v1202_v34 }
  0xfc   :  { %1536 = vst [vmem:[%s2119_s1 + $0x134] sm:$0xf] %v1208_v36  ;;  %1539 = vst [vmem:[%s2119_s1 + $0x140] sm:$0xf] %v1226_v39  ;;  %v1232_v40 = vld [vmem:[#allocation0 + $0x288] sm:$0xf] }
  0xfd   :  { %v1238_v42 = vld [vmem:[#allocation0 + $0x290] sm:$0xf]  ;;  %v1244_v43 = vld [vmem:[#allocation0 + $0x298] sm:$0xf]  ;;  %1537 = vst [vmem:[%s2119_s1 + $0x138] sm:$0xf] %v1214_v37 }
  0xfe   :  { %1538 = vst [vmem:[%s2119_s1 + $0x13c] sm:$0xf] %v1220_v38  ;;  %1540 = vst [vmem:[%s2119_s1 + $0x144] sm:$0xf] %v1232_v40  ;;  %v1250_v44 = vld [vmem:[#allocation0 + $0x2a0] sm:$0xf] }
  0xff   :  { %1541 = vst [vmem:[%s2119_s1 + $0x148] sm:$0xf] %v1238_v42  ;;  %1542 = vst [vmem:[%s2119_s1 + $0x14c] sm:$0xf] %v1244_v43  ;;  %v1256_v45 = vld [vmem:[#allocation0 + $0x2a8] sm:$0xf] }
 0x100   :  { %v1262_v47 = vld [vmem:[#allocation0 + $0x2b0] sm:$0xf]  ;;  %1543 = vst [vmem:[%s2119_s1 + $0x150] sm:$0xf] %v1250_v44  ;;  %1544 = vst [vmem:[%s2119_s1 + $0x154] sm:$0xf] %v1256_v45 }
 0x101   :  { %1545 = vst [vmem:[%s2119_s1 + $0x158] sm:$0xf] %v1262_v47  ;;  %v1268_v48 = vld [vmem:[#allocation0 + $0x2b8] sm:$0xf]  ;;  %v1274_v50 = vld [vmem:[#allocation0 + $0x2c0] sm:$0xf] }
 0x102   :  { %v1280_v51 = vld [vmem:[#allocation0 + $0x2c8] sm:$0xf]  ;;  %1546 = vst [vmem:[%s2119_s1 + $0x15c] sm:$0xf] %v1268_v48  ;;  %1547 = vst [vmem:[%s2119_s1 + $0x160] sm:$0xf] %v1274_v50 }
 0x103   :  { %1548 = vst [vmem:[%s2119_s1 + $0x164] sm:$0xf] %v1280_v51 }

// kernel: restore_slp_forward.2
= control target key start
LH: loop header
LB: loop body
LE: loop exit
PB: predicated region body
PF: predicated region fallthrough
CT: control target
= control target key end

     0   :  { %v546_v0 = vmov inf   ;;  %v548_v1 = vmov -inf   ;;  %v550_v2 = vmov 0.0   ;;  %v552_v3 = vmov 0.0   ;;  %s560_s9 = smov 0   ;;  %s710_s0 = inlined_call_operand.vmem [shape: f32[29,8,128], index: 0, kind: input, shape index: {}]   ;;  %s711_s1 = inlined_call_operand.vmem [shape: f32[29,8,128], index: 1, kind: input, shape index: {}]   ;;  %s712_s2 = inlined_call_operand.vmem [shape: f32[1,128], index: 2, kind: output, shape index: {}]  }
   0x1   :  { %v554_v4 = vmov 0.0   ;;  %v556_v5 = vmov 0.0   ;;  %v558_v6 = vmov 0.0  }
   0x2 LB: > { %s345_s10 = sshll.u32 %s518_s9, 3  ;;  %v600_v10 = vmov 0.0   ;;  %s602_s17 = smov 0   ;;  %s518_s9 = sphi %s560_s9, %s16_s9   ;;  %v514_v6 = vphi %v558_v6, %v721_v6   ;;  %v510_v5 = vphi %v556_v5, %v720_v5   ;;  %v506_v4 = vphi %v554_v4, %v719_v4   ;;  %v502_v3 = vphi %v552_v3, %v718_v3   ;;  %v498_v2 = vphi %v550_v2, %v717_v2   ;;  %v494_v1 = vphi %v548_v1, %v716_v1   ;;  %v490_v0 = vphi %v546_v0, %v715_v0  }
   0x3   : > { %s25_s13 = scalar_lea.vmem %s710_s0, %s345_s10  ;;  %s27_s16 = scalar_lea.vmem %s711_s1, %s345_s10 }
   0x4   : > { %v593_v7 = vld [vmem:[%s25_s13] sm:$0xff] }
   0x5   : > { %v595_v8 = vld [vmem:[%s27_s16] sm:$0xff]  ;;  %v598_v9 = vadd.f32 1e-08, %v593_v7 }
   0x6 LB: >> { %v42_v11 = vlaneseq  ;;  %s346_s18 = sshll.u32 %s526_s17, 3  ;;  %v528_v50 = vmov 0.0   ;;  %s35_s17 = sadd.s32 1, %s526_s17   ;;  %s526_s17 = sphi %s602_s17, %s35_s17   ;;  %v522_v10 = vphi %v600_v10, %v713_v10  }
   0x7   : >> { %s38_s21 = scalar_lea.vmem %s710_s0, %s346_s18  ;;  %s40_s24 = scalar_lea.vmem %s711_s1, %s346_s18 }
   0x8   : >> { %v609_v12 = vshrl.u32 %v42_v11, 7  ;;  %v617_v13 = vld [vmem:[%s38_s21] sm:$0xff]  ;;  %p32_p0 = scmp.ge.s32.totalorder %s35_s17, 29  }
   0x9   : >> { %v619_v14 = vld [vmem:[%s40_s24] sm:$0xff]  ;;  %s16_s9 = sadd.s32 (%p32_p0), 1, %s518_s9  }
   0xa   : >> { %v44_v15 = vsub.s32 0, %v609_v12  ;;  %v63_v16 = vsub.s32 1, %v609_v12  ;;  %v82_v17 = vsub.s32 2, %v609_v12  ;;  %v101_v18 = vsub.s32 3, %v609_v12  ;;  %p13_p1 = scmp.ge.s32.totalorder (%p32_p0), %s16_s9, 29  }
   0xb   : >> { %v120_v19 = vsub.s32 4, %v609_v12  ;;  %v139_v20 = vsub.s32 5, %v609_v12  ;;  %v158_v21 = vsub.s32 6, %v609_v12  ;;  %v177_v22 = vsub.s32 7, %v609_v12 }
   0xc   : >> { %v45_v23 = vrot.slane %v617_v13, %v44_v15  ;;  %v50_v24 = vrot.slane %v619_v14, %v44_v15  ;;  %v64_v25 = vrot.slane %v617_v13, %v63_v16  ;;  %v69_v26 = vrot.slane %v619_v14, %v63_v16 }
   0xd   : >> { %v83_v27 = vrot.slane %v617_v13, %v82_v17  ;;  %v88_v28 = vrot.slane %v619_v14, %v82_v17  ;;  %v102_v29 = vrot.slane %v617_v13, %v101_v18  ;;  %v107_v30 = vrot.slane %v619_v14, %v101_v18 }
   0xe   : >> { %v46_v31 = vsub.f32 %v598_v9, %v45_v23  ;;  %v51_v32 = vsub.f32 %v595_v8, %v50_v24  ;;  %v65_v33 = vsub.f32 %v598_v9, %v64_v25  ;;  %v70_v34 = vsub.f32 %v595_v8, %v69_v26 }
   0xf   : >> { %v84_v35 = vsub.f32 %v598_v9, %v83_v27  ;;  %v89_v36 = vsub.f32 %v595_v8, %v88_v28  ;;  %v103_v37 = vsub.f32 %v598_v9, %v102_v29  ;;  %v108_v38 = vsub.f32 %v595_v8, %v107_v30 }
  0x10   : >> { %v52_v39 = vmul.f32 %v51_v32, %v46_v31  ;;  %v54_v40 = vand.u32 2147483647, %v51_v32  ;;  %v55_v41 = vand.u32 2147483647, %v46_v31  ;;  %v71_v42 = vmul.f32 %v70_v34, %v65_v33 }
  0x11   : >> { %v73_v43 = vand.u32 2147483647, %v70_v34  ;;  %v74_v44 = vand.u32 2147483647, %v65_v33  ;;  %v90_v45 = vmul.f32 %v89_v36, %v84_v35  ;;  %v92_v46 = vand.u32 2147483647, %v89_v36 }
  0x12   : >> { %vm53_vm0 = vcmp.lt.f32.partialorder %v52_v39, 0.0  ;;  %vm56_vm1 = vcmp.lt.f32.partialorder %v54_v40, %v55_v41  ;;  %vm72_vm2 = vcmp.lt.f32.partialorder %v71_v42, 0.0  ;;  %v93_v47 = vand.u32 2147483647, %v84_v35 }
  0x13   : >> { %vm57_vm3 = vmand %vm53_vm0, %vm56_vm1  ;;  %vm75_vm4 = vcmp.lt.f32.partialorder %v73_v43, %v74_v44  ;;  %vm91_vm5 = vcmp.lt.f32.partialorder %v90_v45, 0.0  ;;  %v109_v48 = vmul.f32 %v108_v38, %v103_v37  ;;  %v111_v49 = vand.u32 2147483647, %v108_v38 }
  0x14   : >> { %v347_v51 = vsel %vm57_vm3, 1.0, %v528_v50  ;;  %vm76_vm6 = vmand %vm72_vm2, %vm75_vm4  ;;  %vm94_vm7 = vcmp.lt.f32.partialorder %v92_v46, %v93_v47  ;;  %v112_v52 = vand.u32 2147483647, %v103_v37  ;;  %v121_v53 = vrot.slane %v617_v13, %v120_v19 }
  0x15   : >> { %v60_v54 = vadd.f32 %v522_v10, %v347_v51  ;;  %v348_v55 = vsel %vm76_vm6, 1.0, %v528_v50  ;;  %vm95_vm8 = vmand %vm91_vm5, %vm94_vm7  ;;  %vm110_vm9 = vcmp.lt.f32.partialorder %v109_v48, 0.0  ;;  %v126_v56 = vrot.slane %v619_v14, %v120_v19 }
  0x16   : >> { %v349_v57 = vsel %vm95_vm8, 1.0, %v528_v50  ;;  %vm113_vm10 = vcmp.lt.f32.partialorder %v111_v49, %v112_v52  ;;  %v122_v58 = vsub.f32 %v598_v9, %v121_v53  ;;  %v140_v59 = vrot.slane %v617_v13, %v139_v20 }
  0x17   : >> { %v79_v60 = vadd.f32 %v348_v55, %v60_v54  ;;  %vm114_vm11 = vmand %vm110_vm9, %vm113_vm10  ;;  %v127_v61 = vsub.f32 %v595_v8, %v126_v56  ;;  %v145_v62 = vrot.slane %v619_v14, %v139_v20  ;;  %v159_v63 = vrot.slane %v617_v13, %v158_v21 }
  0x18   : >> { %v350_v10 = vsel %vm114_vm11, 1.0, %v528_v50  ;;  %v131_v11 = vand.u32 2147483647, %v122_v58  ;;  %v141_v15 = vsub.f32 %v598_v9, %v140_v59  ;;  %v164_v16 = vrot.slane %v619_v14, %v158_v21 }
  0x19   : >> { %v98_v17 = vadd.f32 %v349_v57, %v79_v60  ;;  %v128_v18 = vmul.f32 %v127_v61, %v122_v58  ;;  %v130_v19 = vand.u32 2147483647, %v127_v61  ;;  %v146_v23 = vsub.f32 %v595_v8, %v145_v62 }
  0x1a   : >> { %v150_v24 = vand.u32 2147483647, %v141_v15  ;;  %v160_v25 = vsub.f32 %v598_v9, %v159_v63  ;;  %v165_v26 = vsub.f32 %v595_v8, %v164_v16  ;;  %v178_v20 = vrot.slane %v617_v13, %v177_v22 }
  0x1b   : >> { %v117_v27 = vadd.f32 %v350_v10, %v98_v17  ;;  %vm129_vm12 = vcmp.lt.f32.partialorder %v128_v18, 0.0  ;;  %vm132_vm13 = vcmp.lt.f32.partialorder %v130_v19, %v131_v11  ;;  %v147_v28 = vmul.f32 %v146_v23, %v141_v15 }
  0x1c   : >> { %vm133_vm14 = vmand %vm129_vm12, %vm132_vm13  ;;  %v149_v21 = vand.u32 2147483647, %v146_v23  ;;  %v166_v29 = vmul.f32 %v165_v26, %v160_v25  ;;  %v168_v30 = vand.u32 2147483647, %v165_v26  ;;  %v169_v31 = vand.u32 2147483647, %v160_v25 }
  0x1d   : >> { %v351_v32 = vsel %vm133_vm14, 1.0, %v528_v50  ;;  %vm148_vm15 = vcmp.lt.f32.partialorder %v147_v28, 0.0  ;;  %v179_v33 = vsub.f32 %v598_v9, %v178_v20  ;;  %v183_v34 = vrot.slane %v619_v14, %v177_v22 }
  0x1e   : >> { %v136_v35 = vadd.f32 %v351_v32, %v117_v27  ;;  %vm151_vm0 = vcmp.lt.f32.partialorder %v149_v21, %v150_v24  ;;  %vm167_vm1 = vcmp.lt.f32.partialorder %v166_v29, 0.0  ;;  %vm170_vm2 = vcmp.lt.f32.partialorder %v168_v30, %v169_v31 }
  0x1f   : >> { %vm152_vm3 = vmand %vm148_vm15, %vm151_vm0  ;;  %v184_v13 = vsub.f32 %v595_v8, %v183_v34  ;;  %v188_v36 = vand.u32 2147483647, %v179_v33  ;;  %v220_v22 = vmul.f32 (%p32_p0), %v595_v8, %v593_v7  ;;  %v229_v43 = vmul.f32 (%p32_p0), %v593_v7, %v593_v7 }
  0x20   : >> { %v352_v37 = vsel %vm152_vm3, 1.0, %v528_v50  ;;  %vm171_vm4 = vmand %vm167_vm1, %vm170_vm2  ;;  %v529_v44 = vmov (%p32_p0), 0.0  }
  0x21   : >> { %v155_v38 = vadd.f32 %v352_v37, %v136_v35  ;;  %v353_v39 = vsel %vm171_vm4, 1.0, %v528_v50  ;;  %v185_v40 = vmul.f32 %v184_v13, %v179_v33  ;;  %v187_v41 = vand.u32 2147483647, %v184_v13 }
  0x22   : > { %34 = sbr.rel (!%p32_p0) target bundleno = 6 (0x6), region = 46 }
  0x23   : >> { %v174_v42 = vadd.f32 %v353_v39, %v155_v38  ;;  %vm186_vm5 = vcmp.lt.f32.partialorder %v185_v40, 0.0  ;;  %vm189_vm6 = vcmp.lt.f32.partialorder %v187_v41, %v188_v36 }
  0x24   : >> { %vm190_vm7 = vmand %vm186_vm5, %vm189_vm6 }
  0x25   : >> { %v354_v12 = vsel %vm190_vm7, 1.0, %v528_v50 }
  0x26   : >> { %v193_v14 = vadd.f32 %v354_v12, %v174_v42  }
  0x28   : >> { %v713_v10 = vmov %v193_v14  ;;  %vm194_vm8 = vcmp.ge.f32.partialorder (%p32_p0), %v193_v14, 112.5 }
  0x29   : > { %v355_v45 = vsel %vm194_vm8, 1.0, %v529_v44 }
  0x2a   : > { %v197_v46 = vrot.slane %v355_v45, 4  ;;  %v204_v47 = vmul.f32 %v355_v45, %v593_v7  ;;  %v212_v48 = vmul.f32 %v355_v45, %v595_v8  ;;  %v221_v49 = vmul.f32 %v355_v45, %v220_v22 }
  0x2b   : > { %v230_v50 = vmul.f32 %v355_v45, %v229_v43  ;;  %v245_v51 = vsub.f32 1.0, %v355_v45 }
  0x2c   : > { %v198_v52 = vadd.f32 %v355_v45, %v197_v46  ;;  %v205_v53 = vrot.slane %v204_v47, 4  ;;  %v213_v54 = vrot.slane %v212_v48, 4  ;;  %v222_v9 = vrot.slane %v221_v49, 4 }
  0x2d   : > { %v231_v55 = vrot.slane %v230_v50, 4  ;;  %v246_v56 = vmul.f32 1e+08, %v245_v51 }
  0x2e   : > { %v199_v57 = vrot.slane %v198_v52, 2  ;;  %v206_v58 = vadd.f32 %v205_v53, %v204_v47  ;;  %v214_v59 = vadd.f32 %v213_v54, %v212_v48  ;;  %v223_v60 = vadd.f32 %v222_v9, %v221_v49 }
  0x2f   : > { %v232_v61 = vadd.f32 %v231_v55, %v230_v50  ;;  %v239_v62 = vmax.f32 %v204_v47, %v205_v53  ;;  %v247_v63 = vadd.f32 %v246_v56, %v593_v7 }
  0x30   : > { %v200_v10 = vadd.f32 %v199_v57, %v198_v52  ;;  %v207_v11 = vrot.slane %v206_v58, 2  ;;  %v215_v8 = vrot.slane %v214_v59, 2  ;;  %v224_v15 = vrot.slane %v223_v60, 2 }
  0x31   : > { %v233_v16 = vrot.slane %v232_v61, 2  ;;  %v240_v17 = vrot.slane %v239_v62, 2  ;;  %v248_v18 = vrot.slane %v247_v63, 4 }
  0x32   : > { %v201_v19 = vrot.slane %v200_v10, 1  ;;  %v208_v23 = vadd.f32 %v207_v11, %v206_v58  ;;  %v216_v24 = vadd.f32 %v215_v8, %v214_v59  ;;  %v225_v25 = vadd.f32 %v224_v15, %v223_v60 }
  0x33   : > { %v234_v26 = vadd.f32 %v233_v16, %v232_v61  ;;  %v241_v20 = vmax.f32 %v239_v62, %v240_v17  ;;  %v249_v27 = vmin.f32 %v247_v63, %v248_v18  ;;  %v530_v63 = vmov (%p13_p1), 0.0  }
  0x34   : > { %v202_v28 = vadd.f32 %v201_v19, %v200_v10  ;;  %v209_v21 = vrot.slane %v208_v23, 1  ;;  %v217_v29 = vrot.slane %v216_v24, 1  ;;  %v226_v30 = vrot.slane %v225_v25, 1 }
  0x35   : > { %v235_v31 = vrot.slane %v234_v26, 1  ;;  %v242_v7 = vrot.slane %v241_v20, 1  ;;  %v250_v32 = vrot.slane %v249_v27, 2 }
  0x36   : > { %v678_v6 = vadd.f32 %v514_v6, %v202_v28   ;;  %v210_v34 = vadd.f32 %v209_v21, %v208_v23  ;;  %v218_v35 = vadd.f32 %v217_v29, %v216_v24  ;;  %v227_v13 = vadd.f32 %v226_v30, %v225_v25 }
  0x37   : > { %v236_v36 = vadd.f32 %v235_v31, %v234_v26  ;;  %v243_v37 = vmax.f32 %v241_v20, %v242_v7  ;;  %v251_v38 = vmin.f32 %v249_v27, %v250_v32 }
  0x38   : > { %v714_v33 = vmov %v678_v6  ;;  %v211_v39 = vadd.f32 %v510_v5, %v210_v34   ;;  %v219_v40 = vadd.f32 %v506_v4, %v218_v35   ;;  %v228_v41 = vadd.f32 %v502_v3, %v227_v13  }
  0x39   : > { %v237_v42 = vadd.f32 %v498_v2, %v236_v36   ;;  %v244_v12 = vmax.f32 %v494_v1, %v243_v37   ;;  %v252_v14 = vrot.slane %v251_v38, 1  ;;  %v721_v6 = vmov %v714_v33  ;;  %15 = sbr.rel (!%p13_p1) target bundleno = 2 (0x2), region = 57 }
  0x3a   : > { %v718_v3 = vmov %v228_v41  ;;  %v719_v4 = vmov %v219_v40  ;;  %v720_v5 = vmov %v211_v39  ;;  %v255_v6 = vadd.f32 (%p13_p1), 1e-05, %v714_v33 }
  0x3b   : > { %v253_v22 = vmin.f32 %v251_v38, %v252_v14  ;;  %v716_v1 = vmov %v244_v12  ;;  %v717_v2 = vmov %v237_v42  ;;  %vm284_vm11 = vcmp.gt.f32.partialorder (%p13_p1), %v714_v33, 10.0 }
  0x3c   :  { %440 = vrcp.f32 (%p13_p1), %v255_v6 }
  0x3d   : > { %v254_v43 = vmin.f32 %v490_v0, %v253_v22  }
  0x3f   : > { %v715_v0 = vmov %v254_v43  ;;  %v282_v4 = vsub.f32 (%p13_p1), %v244_v12, %v254_v43 }
  0x46   :  { %v441_v44 = vpop.eup %440 }
  0x47   :  { %v257_v45 = vmul.f32 %v441_v44, %v211_v39  ;;  %v258_v50 = vmul.f32 %v441_v44, %v219_v40 }
  0x49   :  { %v259_v46 = vmul.f32 %v257_v45, %v714_v33 }
  0x4b   :  { %v262_v47 = vmul.f32 %v259_v46, %v257_v45  ;;  %v260_v51 = vmul.f32 %v259_v46, %v258_v50 }
  0x4d   :  { %v263_v48 = vsub.f32 %v237_v42, %v262_v47  ;;  %v261_v52 = vsub.f32 %v228_v41, %v260_v51 }
  0x4f   :  { %v264_v49 = vadd.f32 1e-05, %v263_v48 }
  0x51   :  { %442 = vrcp.f32 %v264_v49 }
  0x5b   :  { %v443_v53 = vpop.eup %442 }
  0x5c   :  { %v266_v54 = vmul.f32 %v443_v53, %v261_v52 }
  0x5e   :  { %v267_v9 = vmul.f32 %v266_v54, %v257_v45  ;;  %v273_v55 = vmul.f32 %v266_v54, %v266_v54  ;;  %vm287_vm12 = vcmp.gt.f32.partialorder %v266_v54, -1.0  ;;  %vm289_vm14 = vcmp.lt.f32.partialorder %v266_v54, 0.0 }
  0x60   :  { %v268_v56 = vsub.f32 %v258_v50, %v267_v9  ;;  %v274_v57 = vadd.f32 1.0, %v273_v55 }
  0x62   :  { %v269_v0 = vadd.f32 1e-08, %v268_v56  ;;  %444 = vrsqrt.f32 %v274_v57  ;;  %vm277_vm9 = vcmp.eq.f32.partialorder %v274_v57, inf  ;;  %v280_v2 = vand.u32 2147483648, %v274_v57 }
  0x63   :  { %vm279_vm10 = vcmp.eq.f32.partialorder %v274_v57, 0.0 }
  0x64   :  { %446 = vrcp.f32 %v269_v0 }
  0x6c   :  { %v445_v1 = vpop.eup %444 }
  0x6d   :  { %v276_v3 = vmul.f32 %v445_v1, %v274_v57 }
  0x6e   :  { %v447_v5 = vpop.eup %446 }
  0x6f   :  { %v271_v58 = vmul.f32 %v447_v5, %v266_v54  ;;  %v278_v59 = vsel %vm277_vm9, %v274_v57, %v276_v3 }
  0x70   :  { %v281_v60 = vsel %vm279_vm10, %v280_v2, %v278_v59 }
  0x71   :  { %v272_v61 = vadd.f32 1.0, %v271_v58  ;;  %v283_v62 = vmul.f32 %v282_v4, %v281_v60 }
  0x73   :  { %vm285_vm13 = vcmp.gt.f32.partialorder %v283_v62, 0.1  ;;  %vm291_vm0 = vcmp.gt.f32.partialorder %v272_v61, 0.01  ;;  %vm293_vm2 = vcmp.lt.f32.partialorder %v272_v61, 0.99 }
  0x74   :  { %vm286_vm15 = vmand %vm284_vm11, %vm285_vm13 }
  0x75   :  { %vm288_vm1 = vmand %vm286_vm15, %vm287_vm12 }
  0x76   :  { %vm290_vm3 = vmand %vm288_vm1, %vm289_vm14 }
  0x77   :  { %vm292_vm4 = vmand %vm290_vm3, %vm291_vm0 }
  0x78   :  { %vm294_vm5 = vmand %vm292_vm4, %vm293_vm2 }
  0x79   :  { %v356_v10 = vsel %vm294_vm5, 1.0, %v530_v63 }
  0x7a   :  { %v297_v11 = vmul.f32 %v356_v10, %v272_v61 }
  0x7c   :  { %298 = vst [vmem:[%s712_s2] sm:$0x1] %v297_v11 }

// kernel: restore_slp_forward.3
= control target key start
LH: loop header
LB: loop body
LE: loop exit
PB: predicated region body
PF: predicated region fallthrough
CT: control target
= control target key end

     0   :  { %s549_s12 = smov 0   ;;  %s551_s13 = smov 0   ;;  %s593_s0 = inlined_call_operand.vmem [shape: f32[2,3,1024], index: 0, kind: input, shape index: {}]   ;;  %s594_s1 = inlined_call_operand.vmem [shape: f32[2,3,1], index: 1, kind: input, shape index: {}]   ;;  %s595_s2 = inlined_call_operand.vmem [shape: f32[2,1,1024], index: 2, kind: input, shape index: {}]   ;;  %s596_s3 = inlined_call_operand.vmem [shape: f32[2,3,1024], index: 3, kind: output, shape index: {}]  }
   0x1   :  { %s553_s14 = smov 0  }
   0x2 LB: > { %s25_s15 = sadd.s32 1, %s521_s13  ;;  %p457_p0 = scmp.ge.s32.totalorder %s525_s14, 1  ;;  %s525_s14 = sphi %s553_s14, %s13_s14   ;;  %s521_s13 = sphi %s551_s13, %s598_s13   ;;  %s517_s12 = sphi %s549_s12, %s597_s12  }
   0x3   : > { %p27_p1 = scmp.ge.s32.totalorder %s25_s15, 2  ;;  %p183_p2 = scmp.lt.s32.totalorder %s525_s14, 3 }
   0x5   : > { %s600_s15 = smov (%p27_p1, %s25_s15), 0  ;;  %p184_p3 = pnand %p457_p0, %p183_p2 }
   0x6   : > { %p228_p4 = scmp.lt.s32.totalorder (!%p184_p3), %s517_s12, 1  ;;  %v527_v0 = vmov (!%p184_p3), 0   ;;  %v273_v2 = vlaneseq (!%p184_p3)  ;;  %v528_v25 = vmov (!%p184_p3), 839922192  }
   0x7   : > { %187 = sbr.rel (%p184_p3) target bundleno = 156 (0x9c), region = 32  ;;  %494 = vset.pattern.permute.xlu0 (!%p184_p3), %v527_v0  ;;  %v271_v26 = vunpack.c.l.s4 (!%p184_p3), %v528_v25 }
   0x8   : > { %v274_v3 = vshrl.u32 (!%p184_p3), %v273_v2, 7 }
   0x9   : > { %v272_v27 = vunpack.c.0.s8 (!%p184_p3), %v271_v26 }
   0xa   : > { %v285_v4 = vsub.s32 (!%p184_p3), 0, %v274_v3  ;;  %v289_v5 = vsub.s32 (!%p184_p3), 1, %v274_v3  ;;  %v293_v7 = vsub.s32 (!%p184_p3), 2, %v274_v3  ;;  %v297_v8 = vsub.s32 (!%p184_p3), 3, %v274_v3 }
   0xb   : > { %v301_v9 = vsub.s32 (!%p184_p3), 4, %v274_v3  ;;  %v305_v10 = vsub.s32 (!%p184_p3), 5, %v274_v3  ;;  %v309_v11 = vsub.s32 (!%p184_p3), 6, %v274_v3  ;;  %v313_v12 = vsub.s32 (!%p184_p3), 7, %v274_v3 }
   0xc   : > { %v275_v28 = vsub.s32 (!%p184_p3), %v272_v27, %v274_v3 }
   0xe   : > { %s602_s12 = smov (!%p228_p4, %s517_s12), 1 }
   0xf   : > { %s460_s16 = sshll.u32 %s602_s12, 2  ;;  %s461_s20 = sshll.u32 %s602_s12, 3 }
  0x10   : > { %s240_s19 = scalar_lea.vmem %s594_s1, %s460_s16  ;;  %s248_s23 = scalar_lea.vmem %s595_s2, %s461_s20 }
  0x11   : > { %v264_v1 = vld [vmem:[%s240_s19] sm:$0x7]  ;;  %s466_s24 = sshll.u32 %s602_s12, 5 }
  0x12   : > { %268 = vperm.xlu0 %494, %v264_v1   ;;  %v265_v6 = vld [vmem:[%s248_s23] sm:$0xff]  ;;  %s235_s27 = scalar_lea.vmem %s593_s0, %s466_s24  ;;  %s258_s30 = scalar_lea.vmem %s596_s3, %s466_s24 }
  0x13   : > { %v286_v13 = vrot.slane %v265_v6, %v285_v4  ;;  %v290_v14 = vrot.slane %v265_v6, %v289_v5  ;;  %v294_v15 = vrot.slane %v265_v6, %v293_v7  ;;  %v298_v16 = vrot.slane %v265_v6, %v297_v8  ;;  %v260_v30 = vld [vmem:[%s235_s27] sm:$0x77]  ;;  %v261_v32 = vld [vmem:[%s235_s27 + $0x8] sm:$0x77]  ;;  %v262_v33 = vld [vmem:[%s235_s27 + $0x10] sm:$0x77] }
  0x14   : > { %v302_v17 = vrot.slane %v265_v6, %v301_v9  ;;  %v306_v18 = vrot.slane %v265_v6, %v305_v10  ;;  %v310_v19 = vrot.slane %v265_v6, %v309_v11  ;;  %v314_v20 = vrot.slane %v265_v6, %v313_v12  ;;  %v263_v34 = vld [vmem:[%s235_s27 + $0x18] sm:$0x77] }
  0x15   : > { %v315_v21 = vcombine.low %v286_v13, %v290_v14  ;;  %v316_v22 = vcombine.low %v294_v15, %v298_v16 }
  0x16   : > { %v317_v23 = vcombine.low %v302_v17, %v306_v18  ;;  %v318_v24 = vcombine.low %v310_v19, %v314_v20 }
  0x17   : > { %495 = vrcp.f32 %v315_v21 }
  0x18   : > { %497 = vrcp.f32 %v316_v22 }
  0x19   : > { %499 = vrcp.f32 %v317_v23 }
  0x1a   : > { %501 = vrcp.f32 %v318_v24 }
  0x21   : > { %v496_v29 = vpop.eup %495 }
  0x22   : > { %v498_v31 = vpop.eup %497 }
  0x23   : > { %v500_v36 = vpop.eup %499 }
  0x24   : > { %v502_v38 = vpop.eup %501 }
  0x91   : > { %v269_v35 = vpop.permute.xlu0 %268 }
  0x92   : > { %v276_v37 = vrot.slane %v269_v35, %v275_v28 }
  0x94   : > { %v278_v39 = vsub.f32 %v260_v30, %v276_v37  ;;  %v279_v40 = vsub.f32 %v261_v32, %v276_v37  ;;  %v280_v41 = vsub.f32 %v262_v33, %v276_v37  ;;  %v281_v42 = vsub.f32 %v263_v34, %v276_v37 }
  0x96   : > { %v324_v43 = vmul.f32 %v496_v29, %v278_v39  ;;  %v326_v44 = vmul.f32 %v498_v31, %v279_v40  ;;  %v328_v45 = vmul.f32 %v500_v36, %v280_v41  ;;  %v330_v46 = vmul.f32 %v502_v38, %v281_v42 }
  0x98   : > { %v331_v47 = vadd.f32 %v324_v43, %v276_v37  ;;  %v332_v48 = vadd.f32 %v326_v44, %v276_v37  ;;  %v333_v49 = vadd.f32 %v328_v45, %v276_v37  ;;  %v334_v50 = vadd.f32 %v330_v46, %v276_v37 }
  0x9a   : > { %335 = vst [vmem:[%s258_s30] sm:$0x77] %v331_v47  ;;  %336 = vst [vmem:[%s258_s30 + $0x8] sm:$0x77] %v332_v48 }
  0x9b   : > { %337 = vst [vmem:[%s258_s30 + $0x10] sm:$0x77] %v333_v49  ;;  %338 = vst [vmem:[%s258_s30 + $0x18] sm:$0x77] %v334_v50 }
  0x9c PF: > { %s13_s14 = sadd.s32 1, %s525_s14   ;;  %s597_s12 = smov %s521_s13 }
  0x9d   : > { %p10_p5 = scmp.ge.s32.totalorder %s13_s14, 4   ;;  %s598_s13 = smov %s600_s15 }
  0x9f   :  { %12 = sbr.rel (!%p10_p5) target bundleno = 2 (0x2), region = 68 }

</bundles_post_ra>
